<compile_context>
chip_gen: v6e
topology: v6e:2x2x1
jax: 0.10.0
libtpu: 0.0.40
codegen_flags: <defaults>
</compile_context>

<pallas_src>
import functools

import jax
import jax.numpy as jnp
from jax.experimental import pallas as pl
from jax.experimental.pallas import tpu as pltpu

# ---------------- problem sizes (small, consistent with Bottleneck) ---------
N = 2               # batch
PLANES = 16         # "planes"
WIDTH = PLANES      # width = planes * (base_width/64) * groups  (groups=1)
CIN = PLANES * 4    # inplanes must equal planes * expansion for identity add
COUT = PLANES * 4   # planes * expansion
H = 8
W = 8
HW = H * W
NHW = N * HW
EPS = 1e-5

# MXU operand dtype (accumulation stays float32).  bf16 is the native MXU
# path on v5e/v6e/v7x; set to jnp.float32 to disable mixed precision.
MXU_DTYPE = jnp.bfloat16


# ---------------------------- Pallas kernel ---------------------------------
def bottleneck_kernel(x_ref, w1_ref, w2_ref, w3_ref, mask_ref, bias_ref,
                      out_ref, slab_ref, *, w_dim, width, cout):
    # x_ref   : (N*H*W, CIN)  f32        out_ref : (N*H*W, COUT) f32
    # w1_ref  : (CIN, WIDTH)  bf16       w2_ref  : (9*WIDTH, WIDTH) bf16
    # w3_ref  : (WIDTH, COUT) bf16       mask_ref: (N*H*W, 9*WIDTH) f32
    # bias_ref: (3, 128)      f32        slab_ref: (N*H*W, 9*WIDTH) f32 scratch
    nhw = x_ref.shape[0]
    x = x_ref[...]                                        # (NHW, CIN) f32

    bias = bias_ref[...]                                  # single packed load
    b1 = bias[0:1, :width]
    b2 = bias[1:2, :width]
    b3 = bias[2:3, :cout]

    # ---- conv1 (1x1) + bn1 (scale folded into w1) + relu : one matmul ----
    h1 = jnp.dot(x.astype(MXU_DTYPE), w1_ref[...],
                 preferred_element_type=jnp.float32)
    h1 = jnp.maximum(h1 + b1, 0.0)                        # (NHW, WIDTH) f32

    # ---- conv2 (3x3, pad=1) as ONE im2col matmul --------------------------
    # Build the (NHW, 9*WIDTH) slab: tap t=(dy,dx) is the conv1 output rolled
    # along the flattened (image-major) spatial axis; out-of-image (and
    # cross-image) source pixels are zeroed by the precomputed mask.
    for dy in range(3):
        for dx in range(3):
            t = dy * 3 + dx
            s = (dy - 1) * w_dim + (dx - 1)
            tap = h1 if s == 0 else pltpu.roll(h1, (-s) % nhw, 0)
            slab_ref[:, t * width:(t + 1) * width] = tap
    slab = slab_ref[...] * mask_ref[...]                  # (NHW, 9*WIDTH) f32
    h2 = jnp.dot(slab.astype(MXU_DTYPE), w2_ref[...],
                 preferred_element_type=jnp.float32)
    h2 = jnp.maximum(h2 + b2, 0.0)                        # (NHW, WIDTH) f32

    # ---- conv3 (1x1) + bn3 + residual add + final relu, single store ------
    h3 = jnp.dot(h2.astype(MXU_DTYPE), w3_ref[...],
                 preferred_element_type=jnp.float32)
    out_ref[...] = jnp.maximum(h3 + b3 + x, 0.0)


def bottleneck_pallas(x_nchw, kp):
    # NCHW -> NHWC -> (N*H*W, C).  TODO(synk): at real sizes keep activations
    # NHWC end-to-end instead of paying these HBM transposes per block.
    x_flat = jnp.transpose(x_nchw, (0, 2, 3, 1)).reshape(NHW, CIN)

    kernel = functools.partial(bottleneck_kernel,
                               w_dim=W, width=WIDTH, cout=COUT)
    vmem_spec = lambda: pl.BlockSpec(memory_space=pltpu.MemorySpace.VMEM)

    out_flat = pl.pallas_call(
        kernel,
        out_shape=jax.ShapeDtypeStruct((NHW, COUT), jnp.float32),
        in_specs=[vmem_spec() for _ in range(6)],
        out_specs=vmem_spec(),
        scratch_shapes=[pltpu.VMEM((NHW, 9 * WIDTH), jnp.float32)],
    )(x_flat, kp["w1"], kp["w2"], kp["w3"], kp["mask"], kp["bias"])

    return jnp.transpose(out_flat.reshape(N, H, W, COUT), (0, 3, 1, 2))


# --------------------------- parameter setup --------------------------------
def fold_bn(gamma, beta, mean, var):
    scale = gamma / jnp.sqrt(var + EPS)
    bias = beta - mean * scale
    return scale, bias


def make_params(key):
    ks = jax.random.split(key, 6)
    p = {}
    p["w1"] = 0.1 * jax.random.normal(ks[0], (CIN, WIDTH), jnp.float32)
    p["w2"] = 0.1 * jax.random.normal(ks[1], (3, 3, WIDTH, WIDTH), jnp.float32)
    p["w3"] = 0.1 * jax.random.normal(ks[2], (WIDTH, COUT), jnp.float32)

    def bn(k, c):
        k1, k2, k3, k4 = jax.random.split(k, 4)
        gamma = 0.5 + jax.random.uniform(k1, (c,), jnp.float32)
        beta = 0.1 * jax.random.normal(k2, (c,), jnp.float32)
        mean = 0.1 * jax.random.normal(k3, (c,), jnp.float32)
        var = 0.5 + jax.random.uniform(k4, (c,), jnp.float32)
        return fold_bn(gamma, beta, mean, var)

    p["s1"], p["b1"] = bn(ks[3], WIDTH)
    p["s2"], p["b2"] = bn(ks[4], WIDTH)
    p["s3"], p["b3"] = bn(ks[5], COUT)
    return p


def make_conv2_boundary_mask():
    # (NHW, 9*WIDTH) f32 mask: 1 where tap (dy,dx)'s source pixel lies inside
    # its OWN image (per-image row/col via p = idx mod HW), else 0.
    p = jnp.arange(NHW) % HW
    row = p // W
    col = p % W
    cols = []
    for dy in range(3):
        for dx in range(3):
            yy = row + (dy - 1)
            xx = col + (dx - 1)
            valid = (yy >= 0) & (yy < H) & (xx >= 0) & (xx < W)
            cols.append(jnp.broadcast_to(valid[:, None], (NHW, WIDTH)))
    return jnp.concatenate(cols, axis=1).astype(jnp.float32)


def prepare_kernel_params(p):
    # Fold BN scales into conv weights, cast MXU operands to bf16, pack the
    # three bias vectors into one lane-aligned (3, 128) buffer.
    w1 = (p["w1"] * p["s1"][None, :]).astype(MXU_DTYPE)            # (CIN, WIDTH)
    w2 = (p["w2"] * p["s2"][None, None, None, :]
          ).reshape(9 * WIDTH, WIDTH).astype(MXU_DTYPE)            # (144, WIDTH)
    w3 = (p["w3"] * p["s3"][None, :]).astype(MXU_DTYPE)            # (WIDTH, COUT)
    bias = jnp.zeros((3, 128), jnp.float32)
    bias = bias.at[0, :WIDTH].set(p["b1"])
    bias = bias.at[1, :WIDTH].set(p["b2"])
    bias = bias.at[2, :COUT].set(p["b3"])
    return {"w1": w1, "w2": w2, "w3": w3,
            "mask": make_conv2_boundary_mask(), "bias": bias}


# ------------------------ plain-JAX reference -------------------------------
def ref_bottleneck(x_nchw, p):
    dn = ("NHWC", "HWIO", "NHWC")
    x = jnp.transpose(x_nchw, (0, 2, 3, 1))
    h = jax.lax.conv_general_dilated(
        x, p["w1"].reshape(1, 1, CIN, WIDTH), (1, 1), "VALID",
        dimension_numbers=dn)
    h = jnp.maximum(h * p["s1"] + p["b1"], 0.0)
    h = jax.lax.conv_general_dilated(
        h, p["w2"], (1, 1), ((1, 1), (1, 1)), dimension_numbers=dn)
    h = jnp.maximum(h * p["s2"] + p["b2"], 0.0)
    h = jax.lax.conv_general_dilated(
        h, p["w3"].reshape(1, 1, WIDTH, COUT), (1, 1), "VALID",
        dimension_numbers=dn)
    h = h * p["s3"] + p["b3"]
    return jnp.transpose(jnp.maximum(h + x, 0.0), (0, 3, 1, 2))


if __name__ == "__main__":
    key = jax.random.PRNGKey(0)
    kx, kparam = jax.random.split(key)
    x = jax.random.normal(kx, (N, CIN, H, W), jnp.float32)   # NCHW, like PyTorch
    params = make_params(kparam)
    kernel_params = prepare_kernel_params(params)

    out = jax.block_until_ready(bottleneck_pallas(x, kernel_params))
    ref = jax.block_until_ready(ref_bottleneck(x, params))

    assert out.shape == (N, COUT, H, W), out.shape
    # bf16 MXU operands with f32 accumulation -> mixed-precision tolerance
    # (reference runs the full f32 path).
    assert jnp.allclose(out, ref, atol=5e-2, rtol=5e-2), (
        float(jnp.max(jnp.abs(out - ref))))
    print("KERNEL_OK")
</pallas_src>

<mosaic_0001>
module attributes {stable_mosaic.version = 11 : i64} {
  func.func @bottleneck_kernel(%arg0: memref<128x64xf32, #tpu.memory_space<vmem>>, %arg1: memref<64x16xbf16, #tpu.memory_space<vmem>>, %arg2: memref<144x16xbf16, #tpu.memory_space<vmem>>, %arg3: memref<16x64xbf16, #tpu.memory_space<vmem>>, %arg4: memref<128x144xf32, #tpu.memory_space<vmem>>, %arg5: memref<3x128xf32, #tpu.memory_space<vmem>>, %arg6: memref<128x64xf32, #tpu.memory_space<vmem>>, %arg7: memref<128x144xf32, #tpu.memory_space<vmem>>) attributes {dimension_semantics = [], scalar_prefetch = 0 : i64, scratch_operands = 1 : i64, tpu.core_type = #tpu.core_type<tc>} {
    %c0 = arith.constant 0 : index
    %c0_0 = arith.constant 0 : index
    %0 = vector.load %arg0[%c0, %c0_0] : memref<128x64xf32, #tpu.memory_space<vmem>>, vector<128x64xf32>
    %c0_1 = arith.constant 0 : index
    %c0_2 = arith.constant 0 : index
    %1 = vector.load %arg5[%c0_1, %c0_2] : memref<3x128xf32, #tpu.memory_space<vmem>>, vector<3x128xf32>
    %2 = vector.extract_strided_slice %1 {offsets = [0, 0], sizes = [1, 16], strides = [1, 1]} : vector<3x128xf32> to vector<1x16xf32>
    %3 = vector.extract_strided_slice %1 {offsets = [1, 0], sizes = [1, 16], strides = [1, 1]} : vector<3x128xf32> to vector<1x16xf32>
    %4 = vector.extract_strided_slice %1 {offsets = [2, 0], sizes = [1, 64], strides = [1, 1]} : vector<3x128xf32> to vector<1x64xf32>
    %5 = arith.truncf %0 : vector<128x64xf32> to vector<128x64xbf16>
    %c0_3 = arith.constant 0 : index
    %c0_4 = arith.constant 0 : index
    %6 = vector.load %arg1[%c0_3, %c0_4] : memref<64x16xbf16, #tpu.memory_space<vmem>>, vector<64x16xbf16>
    %cst = arith.constant dense<0.000000e+00> : vector<128x16xf32>
    %7 = tpu.matmul %5, %6, %cst {dimension_numbers = #tpu.dot_dimension_numbers<[1], [0], [0], [1], [0, 0, 1, 1], [], []>} : vector<128x64xbf16>, vector<64x16xbf16>, vector<128x16xf32> -> vector<128x16xf32>
    %8 = vector.broadcast %2 : vector<1x16xf32> to vector<128x16xf32>
    %9 = arith.addf %7, %8 : vector<128x16xf32>
    %cst_5 = arith.constant 0.000000e+00 : f32
    %10 = vector.broadcast %cst_5 : f32 to vector<128x16xf32>
    %11 = arith.maximumf %9, %10 : vector<128x16xf32>
    %c9_i32 = arith.constant 9 : i32
    %12 = tpu.dynamic_rotate %11 by %c9_i32 dim 0 : vector<128x16xf32>, i32 -> vector<128x16xf32>
    %c0_6 = arith.constant 0 : index
    %c0_7 = arith.constant 0 : index
    %13 = vector.load %arg7[%c0_6, %c0_7] : memref<128x144xf32, #tpu.memory_space<vmem>>, vector<128x16xf32>
    tpu.vector_store %arg7[%c0_6, %c0_7], %12 {strides = array<i32>} : memref<128x144xf32, #tpu.memory_space<vmem>>, vector<128x16xf32>,
    %c8_i32 = arith.constant 8 : i32
    %14 = tpu.dynamic_rotate %11 by %c8_i32 dim 0 : vector<128x16xf32>, i32 -> vector<128x16xf32>
    %c0_8 = arith.constant 0 : index
    %c16 = arith.constant 16 : index
    %15 = vector.load %arg7[%c0_8, %c16] : memref<128x144xf32, #tpu.memory_space<vmem>>, vector<128x16xf32>
    tpu.vector_store %arg7[%c0_8, %c16], %14 {strides = array<i32>} : memref<128x144xf32, #tpu.memory_space<vmem>>, vector<128x16xf32>,
    %c7_i32 = arith.constant 7 : i32
    %16 = tpu.dynamic_rotate %11 by %c7_i32 dim 0 : vector<128x16xf32>, i32 -> vector<128x16xf32>
    %c0_9 = arith.constant 0 : index
    %c32 = arith.constant 32 : index
    %17 = vector.load %arg7[%c0_9, %c32] : memref<128x144xf32, #tpu.memory_space<vmem>>, vector<128x16xf32>
    tpu.vector_store %arg7[%c0_9, %c32], %16 {strides = array<i32>} : memref<128x144xf32, #tpu.memory_space<vmem>>, vector<128x16xf32>,
    %c1_i32 = arith.constant 1 : i32
    %18 = tpu.dynamic_rotate %11 by %c1_i32 dim 0 : vector<128x16xf32>, i32 -> vector<128x16xf32>
    %c0_10 = arith.constant 0 : index
    %c48 = arith.constant 48 : index
    %19 = vector.load %arg7[%c0_10, %c48] : memref<128x144xf32, #tpu.memory_space<vmem>>, vector<128x16xf32>
    tpu.vector_store %arg7[%c0_10, %c48], %18 {strides = array<i32>} : memref<128x144xf32, #tpu.memory_space<vmem>>, vector<128x16xf32>,
    %c0_11 = arith.constant 0 : index
    %c64 = arith.constant 64 : index
    %20 = vector.load %arg7[%c0_11, %c64] : memref<128x144xf32, #tpu.memory_space<vmem>>, vector<128x16xf32>
    tpu.vector_store %arg7[%c0_11, %c64], %11 {strides = array<i32>} : memref<128x144xf32, #tpu.memory_space<vmem>>, vector<128x16xf32>,
    %c127_i32 = arith.constant 127 : i32
    %21 = tpu.dynamic_rotate %11 by %c127_i32 dim 0 : vector<128x16xf32>, i32 -> vector<128x16xf32>
    %c0_12 = arith.constant 0 : index
    %c80 = arith.constant 80 : index
    %22 = vector.load %arg7[%c0_12, %c80] : memref<128x144xf32, #tpu.memory_space<vmem>>, vector<128x16xf32>
    tpu.vector_store %arg7[%c0_12, %c80], %21 {strides = array<i32>} : memref<128x144xf32, #tpu.memory_space<vmem>>, vector<128x16xf32>,
    %c121_i32 = arith.constant 121 : i32
    %23 = tpu.dynamic_rotate %11 by %c121_i32 dim 0 : vector<128x16xf32>, i32 -> vector<128x16xf32>
    %c0_13 = arith.constant 0 : index
    %c96 = arith.constant 96 : index
    %24 = vector.load %arg7[%c0_13, %c96] : memref<128x144xf32, #tpu.memory_space<vmem>>, vector<128x16xf32>
    tpu.vector_store %arg7[%c0_13, %c96], %23 {strides = array<i32>} : memref<128x144xf32, #tpu.memory_space<vmem>>, vector<128x16xf32>,
    %c120_i32 = arith.constant 120 : i32
    %25 = tpu.dynamic_rotate %11 by %c120_i32 dim 0 : vector<128x16xf32>, i32 -> vector<128x16xf32>
    %c0_14 = arith.constant 0 : index
    %c112 = arith.constant 112 : index
    %26 = vector.load %arg7[%c0_14, %c112] : memref<128x144xf32, #tpu.memory_space<vmem>>, vector<128x16xf32>
    tpu.vector_store %arg7[%c0_14, %c112], %25 {strides = array<i32>} : memref<128x144xf32, #tpu.memory_space<vmem>>, vector<128x16xf32>,
    %c119_i32 = arith.constant 119 : i32
    %27 = tpu.dynamic_rotate %11 by %c119_i32 dim 0 : vector<128x16xf32>, i32 -> vector<128x16xf32>
    %c0_15 = arith.constant 0 : index
    %c128 = arith.constant 128 : index
    %28 = vector.load %arg7[%c0_15, %c128] : memref<128x144xf32, #tpu.memory_space<vmem>>, vector<128x16xf32>
    tpu.vector_store %arg7[%c0_15, %c128], %27 {strides = array<i32>} : memref<128x144xf32, #tpu.memory_space<vmem>>, vector<128x16xf32>,
    %c0_16 = arith.constant 0 : index
    %c0_17 = arith.constant 0 : index
    %29 = vector.load %arg7[%c0_16, %c0_17] : memref<128x144xf32, #tpu.memory_space<vmem>>, vector<128x144xf32>
    %c0_18 = arith.constant 0 : index
    %c0_19 = arith.constant 0 : index
    %30 = vector.load %arg4[%c0_18, %c0_19] : memref<128x144xf32, #tpu.memory_space<vmem>>, vector<128x144xf32>
    %31 = arith.mulf %29, %30 : vector<128x144xf32>
    %32 = arith.truncf %31 : vector<128x144xf32> to vector<128x144xbf16>
    %c0_20 = arith.constant 0 : index
    %c0_21 = arith.constant 0 : index
    %33 = vector.load %arg2[%c0_20, %c0_21] : memref<144x16xbf16, #tpu.memory_space<vmem>>, vector<144x16xbf16>
    %cst_22 = arith.constant dense<0.000000e+00> : vector<128x16xf32>
    %34 = tpu.matmul %32, %33, %cst_22 {dimension_numbers = #tpu.dot_dimension_numbers<[1], [0], [0], [1], [0, 0, 1, 1], [], []>} : vector<128x144xbf16>, vector<144x16xbf16>, vector<128x16xf32> -> vector<128x16xf32>
    %35 = vector.broadcast %3 : vector<1x16xf32> to vector<128x16xf32>
    %36 = arith.addf %34, %35 : vector<128x16xf32>
    %cst_23 = arith.constant 0.000000e+00 : f32
    %37 = vector.broadcast %cst_23 : f32 to vector<128x16xf32>
    %38 = arith.maximumf %36, %37 : vector<128x16xf32>
    %39 = arith.truncf %38 : vector<128x16xf32> to vector<128x16xbf16>
    %c0_24 = arith.constant 0 : index
    %c0_25 = arith.constant 0 : index
    %40 = vector.load %arg3[%c0_24, %c0_25] : memref<16x64xbf16, #tpu.memory_space<vmem>>, vector<16x64xbf16>
    %cst_26 = arith.constant dense<0.000000e+00> : vector<128x64xf32>
    %41 = tpu.matmul %39, %40, %cst_26 {dimension_numbers = #tpu.dot_dimension_numbers<[1], [0], [0], [1], [0, 0, 1, 1], [], []>} : vector<128x16xbf16>, vector<16x64xbf16>, vector<128x64xf32> -> vector<128x64xf32>
    %42 = vector.broadcast %4 : vector<1x64xf32> to vector<128x64xf32>
    %43 = arith.addf %41, %42 : vector<128x64xf32>
    %44 = arith.addf %43, %0 : vector<128x64xf32>
    %cst_27 = arith.constant 0.000000e+00 : f32
    %45 = vector.broadcast %cst_27 : f32 to vector<128x64xf32>
    %46 = arith.maximumf %44, %45 : vector<128x64xf32>
    %c0_28 = arith.constant 0 : index
    %c0_29 = arith.constant 0 : index
    %47 = vector.load %arg6[%c0_28, %c0_29] : memref<128x64xf32, #tpu.memory_space<vmem>>, vector<128x64xf32>
    tpu.vector_store %arg6[%c0_28, %c0_29], %46 {strides = array<i32>} : memref<128x64xf32, #tpu.memory_space<vmem>>, vector<128x64xf32>,
    return
  }
}

</mosaic_0001>

<bundles_post_ra>
// kernel: tpu_custom_call.1
= control target key start
LH: loop header
LB: loop body
LE: loop exit
PB: predicated region body
PF: predicated region fallthrough
CT: control target
= control target key end

     0   :  { %vm85_vm0 = vcmask 523264   ;;  %v57_v28 = vlaneseq  ;;  %s1503_s14 = smov 112   ;;  %s1504_s15 = smov 16   ;;  %vm258_vm1 = vcmask 130048   ;;  %vm339_vm4 = vcmask 261248   ;;  %s2586_s1 = inlined_call_operand.vmem [shape: bf16[64,16], index: 1, kind: input, shape index: {}]   ;;  %s2587_s0 = inlined_call_operand.vmem [shape: f32[128,64], index: 0, kind: input, shape index: {}]   ;;  %s2588_s5 = inlined_call_operand.vmem [shape: f32[3,128], index: 5, kind: input, shape index: {}]   ;;  %s2589_s4 = inlined_call_operand.vmem [shape: f32[128,144], index: 4, kind: input, shape index: {}]   ;;  %s2590_s2 = inlined_call_operand.vmem [shape: bf16[144,16], index: 2, kind: input, shape index: {}]   ;;  %s2591_s3 = inlined_call_operand.vmem [shape: bf16[16,64], index: 3, kind: input, shape index: {}]   ;;  %s2592_s6 = inlined_call_operand.vmem [shape: f32[128,64], index: 6, kind: output, shape index: {}]  }
   0x1   :  { %v1472_v0 = vld [vmem:[%s2586_s1 + $0x18] sm:$0xff]   ;;  %v1473_v1 = vld [vmem:[%s2586_s1 + $0x10] sm:$0xff]   ;;  %v1474_v2 = vld [vmem:[%s2586_s1 + $0x8] sm:$0xff]   ;;  %s1505_s16 = smov 64   ;;  %s1506_s20 = smov 32   ;;  %vm453_vm5 = vcmask 392448  }
   0x2   :  { %1404 = vmatprep.subr.bf16.mxu0 %v1472_v0  ;;  %v24_v3 = vld [vmem:[%s2587_s0] sm:$0xff]  ;;  %v25_v4 = vld [vmem:[%s2587_s0 + $0x8] sm:$0xff]  ;;  %v26_v7 = vld [vmem:[%s2587_s0 + $0x10] sm:$0xff]  ;;  %v1614_v29 = vshrl.u32 %v57_v28, 7  ;;  %s1507_s21 = smov 48   ;;  %s1508_s26 = smov 80  }
   0x3   :  { %1405 = vmatpush3.bf16.msra.mxu0 %v1472_v0  ;;  %v41_v5 = vpack.c.bf16 %v25_v4, %v24_v3  ;;  %v1475_v6 = vld [vmem:[%s2586_s1] sm:$0xff]   ;;  %v27_v8 = vld [vmem:[%s2587_s0 + $0x18] sm:$0xff]  ;;  %v29_v10 = vld [vmem:[%s2587_s0 + $0x28] sm:$0xff]  ;;  %s1509_s27 = smov 96   ;;  %vm534_vm6 = vcmask 523648   ;;  %vm599_vm7 = vcmask 654848  }
   0x4   :  { %1406 = vmatprep.subr.bf16.mxu0 %v1473_v1  ;;  %v28_v9 = vld [vmem:[%s2587_s0 + $0x20] sm:$0xff]  ;;  %v42_v11 = vpack.c.bf16 %v27_v8, %v26_v7  ;;  %v30_v13 = vld [vmem:[%s2587_s0 + $0x30] sm:$0xff]  ;;  %v31_v14 = vld [vmem:[%s2587_s0 + $0x38] sm:$0xff]  ;;  %v59_v30 = vsub.s32 0, %v1614_v29  ;;  %vm372_vm2 = vcmp.lt.s32.totalorder %v1614_v29, 7  ;;  %vm241_vm3 = vcmp.lt.s32.totalorder %v1614_v29, 1 }
   0x5   :  { %1412 = vmatprep.mubr.msk.bf16.mxu0 %vm85_vm0, %v41_v5  ;;  %v43_v12 = vpack.c.bf16 %v29_v10, %v28_v9  ;;  %v32_v15 = vld [vmem:[%s2587_s0 + $0x40] sm:$0xff]  ;;  %v33_v16 = vld [vmem:[%s2587_s0 + $0x48] sm:$0xff]  ;;  %v44_v17 = vpack.c.bf16 %v31_v14, %v30_v13  ;;  %v34_v19 = vld [vmem:[%s2587_s0 + $0x50] sm:$0xff]  ;;  %vm664_vm8 = vcmask 786048   ;;  %vm729_vm9 = vcmask 917248  }
   0x6   :  { %v45_v18 = vpack.c.bf16 %v33_v16, %v32_v15  ;;  %v35_v20 = vld [vmem:[%s2587_s0 + $0x58] sm:$0xff]  ;;  %v36_v21 = vld [vmem:[%s2587_s0 + $0x60] sm:$0xff]  ;;  %v37_v22 = vld [vmem:[%s2587_s0 + $0x68] sm:$0xff]  ;;  %vm794_vm10 = vcmask 1048448  }
   0x7   :  { %1407 = vmatpush3.bf16.msra.mxu0 %v1473_v1  ;;  %v46_v23 = vpack.c.bf16 %v35_v20, %v34_v19  ;;  %v47_v24 = vpack.c.bf16 %v37_v22, %v36_v21  ;;  %v38_v25 = vld [vmem:[%s2587_s0 + $0x70] sm:$0xff]  ;;  %v39_v26 = vld [vmem:[%s2587_s0 + $0x78] sm:$0xff]  ;;  %v40_v31 = vld [vmem:[%s2588_s5] sm:$0x7] }
   0x8   :  { %1408 = vmatprep.subr.bf16.mxu0 %v1474_v2  ;;  %v48_v27 = vpack.c.bf16 %v39_v26, %v38_v25  ;;  %v1620_v32 = vrot.slane %v40_v31, %v59_v30  ;;  %v860_v21 = vld [vmem:[%s2589_s4 + $0x8] sm:$0xff]  ;;  %v862_v22 = vld [vmem:[%s2589_s4 + $0x18] sm:$0xff] }
   0xb   :  { %1409 = vmatpush3.bf16.msra.mxu0 %v1474_v2 }
   0xc   :  { %1410 = vmatprep.subr.bf16.mxu0 %v1475_v6 }
   0xf   :  { %1411 = vmatpush3.bf16.msra.mxu0 %v1475_v6 }
  0x12   :  { %1413 = vmatmul.mubr.msk.bf16.vlgmr.msra.gmra.mxu0 %vm85_vm0, %v42_v11 }
  0x13   :  { %1416 = vmatprep.mubr.msk.bf16.mxu0 %vm85_vm0, %v43_v12 }
  0x1a   :  { %1417 = vmatmul.mubr.msk.bf16.gmra.mxu0 %vm85_vm0, %v44_v17 }
  0x1b   :  { %1420 = vmatprep.mubr.msk.bf16.mxu0 %vm85_vm0, %v45_v18 }
  0x22   :  { %1421 = vmatmul.mubr.msk.bf16.gmra.mxu0 %vm85_vm0, %v46_v23 }
  0x23   :  { %1424 = vmatprep.mubr.msk.bf16.mxu0 %vm85_vm0, %v47_v24 }
  0x2a   :  { %1425 = vmatmul.mubr.msk.bf16.gmra.mxu0 %vm85_vm0, %v48_v27 }
  0xd2   :  { %v1414_v33 = vpop.f32.mrf.mxu0 }
  0xd3   :  { %v153_v34 = vadd.f32 %v1414_v33, %v1620_v32 }
  0xd4   :  { %v144_v35 = vpop.f32.mrf.mxu0 }
  0xd5   :  { %v209_v36 = vmax.f32 %v153_v34, 0.0  ;;  %v145_v37 = vadd.f32 %v144_v35, %v1620_v32 }
  0xd6   :  { %v1415_v38 = vpop.f32.mrf.mxu0 }
  0xd7   :  { %v156_v39 = vadd.f32 %v1415_v38, %v1620_v32  ;;  %748 = vrot.lane.b32.xlu1 %v209_v36, %s1503_s14  ;;  %297 = vrot.lane.b32.xlu0 %v209_v36, %s1504_s15  ;;  %v1627_v41 = vmax.f32 %v145_v37, 0.0  ;;  %v358_v45 = vrot.slane %v209_v36, 1  ;;  %v225_v51 = vrot.slane %v209_v36, 7 }
  0xd8   :  { %v147_v40 = vpop.f32.mrf.mxu0 }
  0xd9   :  { %v1629_v42 = vmax.f32 %v156_v39, 0.0  ;;  %v148_v43 = vadd.f32 %v147_v40, %v1620_v32  ;;  %v356_v55 = vrot.slane %v1627_v41, 1  ;;  %v223_v60 = vrot.slane %v1627_v41, 7 }
  0xda   :  { %v1418_v44 = vpop.f32.mrf.mxu0 }
  0xdb   :  { %v1634_v46 = vmax.f32 %v148_v43, 0.0  ;;  %v169_v47 = vadd.f32 %v1418_v44, %v1620_v32  ;;  %555 = vrot.lane.b32.xlu0 %v209_v36, %s1505_s16  ;;  %293 = vrot.lane.b32.xlu1 %v1627_v41, %s1504_s15  ;;  %v359_v48 = vrot.slane %v1629_v42, 1  ;;  %v226_v49 = vrot.slane %v1629_v42, 7 }
  0xdc   :  { %v160_v50 = vpop.f32.mrf.mxu0 }
  0xdd   :  { %v357_v52 = vrot.slane %v1634_v46, 1  ;;  %v161_v53 = vadd.f32 %v160_v50, %v1620_v32  ;;  %v1646_v54 = vsel %vm372_vm2, %v358_v45, %v359_v48  ;;  %v1649_v56 = vmax.f32 %v169_v47, 0.0 }
  0xde   :  { %v1419_v57 = vpop.f32.mrf.mxu0  ;;  %812 = vst.msk [vmem:[#allocation2 + $0x18] sm:$0xff] %vm258_vm1, %v1646_v54  ;;  %v1655_v58 = vsel %vm241_vm3, %v225_v51, %v226_v49  ;;  %v224_v59 = vrot.slane %v1634_v46, 7 }
  0xdf   :  { %v1659_v61 = vmax.f32 %v161_v53, 0.0  ;;  %v172_v62 = vadd.f32 %v1419_v57, %v1620_v32  ;;  %551 = vrot.lane.b32.xlu0 %v1627_v41, %s1505_s16  ;;  %557 = vrot.lane.b32.xlu1 %v1629_v42, %s1505_s16  ;;  %v1668_v63 = vsel %vm372_vm2, %v357_v52, %v358_v45  ;;  %263 = vst.msk [vmem:[#allocation2 + $0x40] sm:$0xff] %vm258_vm1, %v1655_v58  ;;  %v362_v9 = vrot.slane %v1649_v56, 1 }
  0xe0   :  { %v1676_v0 = vsel %vm372_vm2, %v356_v55, %v357_v52  ;;  %v163_v1 = vpop.f32.mrf.mxu0  ;;  %811 = vst.msk [vmem:[#allocation2 + $0x8] sm:$0xff] %vm258_vm1, %v1668_v63  ;;  %v1684_v2 = vsel %vm241_vm3, %v224_v59, %v225_v51  ;;  %v1690_v3 = vsel %vm241_vm3, %v223_v60, %v224_v59  ;;  %v229_v10 = vrot.slane %v1649_v56, 7 }
  0xe1   :  { %826 = vst.msk [vmem:[#allocation2 + $0xf8] sm:$0xff] %vm258_vm1, %v1676_v0  ;;  %v360_v4 = vrot.slane %v1659_v61, 1  ;;  %v1693_v5 = vmax.f32 %v172_v62, 0.0  ;;  %v164_v6 = vadd.f32 %v163_v1, %v1620_v32  ;;  %262 = vst.msk [vmem:[#allocation2 + $0x30] sm:$0xff] %vm258_vm1, %v1684_v2  ;;  %v227_v7 = vrot.slane %v1659_v61, 7 }
  0xe2   :  { %261 = vst.msk [vmem:[#allocation2 + $0x20] sm:$0xff] %vm258_vm1, %v1690_v3  ;;  %v1422_v8 = vpop.f32.mrf.mxu0 }
  0xe3   :  { %v1703_v11 = vmax.f32 %v164_v6, 0.0  ;;  %v185_v12 = vadd.f32 %v1422_v8, %v1620_v32  ;;  %750 = vrot.lane.b32.xlu0 %v1629_v42, %s1503_s14  ;;  %553 = vrot.lane.b32.xlu1 %v1634_v46, %s1505_s16  ;;  %v1712_v13 = vsel %vm372_vm2, %v359_v48, %v360_v4  ;;  %v1716_v14 = vsel %vm241_vm3, %v226_v49, %v227_v7  ;;  %v864_v6 = vld [vmem:[%s2589_s4 + $0x28] sm:$0xff] }
  0xe4   :  { %v176_v15 = vpop.f32.mrf.mxu0  ;;  %813 = vst.msk [vmem:[#allocation2 + $0x28] sm:$0xff] %vm258_vm1, %v1712_v13  ;;  %264 = vst.msk [vmem:[#allocation2 + $0x50] sm:$0xff] %vm258_vm1, %v1716_v14  ;;  %v363_v16 = vrot.slane %v1693_v5, 1  ;;  %v230_v17 = vrot.slane %v1693_v5, 7 }
  0xe5   :  { %v361_v18 = vrot.slane %v1703_v11, 1  ;;  %v177_v19 = vadd.f32 %v176_v15, %v1620_v32  ;;  %v830_v20 = vld [vmem:[#allocation2 + $0x18] sm:$0xff]  ;;  %v228_v23 = vrot.slane %v1703_v11, 7  ;;  %v1733_v24 = vmax.f32 %v185_v12, 0.0 }
  0xe6   :  { %v1423_v25 = vpop.f32.mrf.mxu0  ;;  %v1737_v26 = vsel %vm372_vm2, %v362_v9, %v363_v16  ;;  %v1741_v27 = vsel %vm241_vm3, %v229_v10, %v230_v17  ;;  %v894_v37 = vmul.f32 %v862_v22, %v830_v20 }
  0xe7   :  { %v1745_v28 = vsel %vm372_vm2, %v360_v4, %v361_v18  ;;  %v1747_v30 = vmax.f32 %v177_v19, 0.0  ;;  %v188_v31 = vadd.f32 %v1423_v25, %v1620_v32  ;;  %299 = vrot.lane.b32.xlu0 %v1629_v42, %s1504_s15  ;;  %411 = vrot.lane.b32.xlu1 %v1646_v54, %s1506_s20  ;;  %v828_v33 = vld [vmem:[#allocation2 + $0x8] sm:$0xff]  ;;  %816 = vst.msk [vmem:[#allocation2 + $0x58] sm:$0xff] %vm258_vm1, %v1737_v26  ;;  %267 = vst.msk [vmem:[#allocation2 + $0x80] sm:$0xff] %vm258_vm1, %v1741_v27 }
  0xe8   :  { %v1760_v34 = vsel %vm241_vm3, %v227_v7, %v228_v23  ;;  %814 = vst.msk [vmem:[#allocation2 + $0x38] sm:$0xff] %vm258_vm1, %v1745_v28  ;;  %v179_v35 = vpop.f32.mrf.mxu0  ;;  %v892_v36 = vmul.f32 %v860_v21, %v828_v33  ;;  %v1768_v38 = vsel %vm372_vm2, %v361_v18, %v362_v9  ;;  %v1772_v39 = vsel %vm241_vm3, %v228_v23, %v229_v10  ;;  %v866_v7 = vld [vmem:[%s2589_s4 + $0x38] sm:$0xff] }
  0xe9   :  { %265 = vst.msk [vmem:[#allocation2 + $0x60] sm:$0xff] %vm258_vm1, %v1760_v34  ;;  %v1774_v40 = vmax.f32 %v188_v31, 0.0  ;;  %v180_v42 = vadd.f32 %v179_v35, %v1620_v32  ;;  %815 = vst.msk [vmem:[#allocation2 + $0x48] sm:$0xff] %vm258_vm1, %v1768_v38  ;;  %v364_v43 = vrot.slane %v1747_v30, 1  ;;  %v231_v44 = vrot.slane %v1747_v30, 7 }
  0xea   :  { %266 = vst.msk [vmem:[#allocation2 + $0x70] sm:$0xff] %vm258_vm1, %v1772_v39  ;;  %v1426_v45 = vpop.f32.mrf.mxu0  ;;  %v924_v47 = vpack.c.bf16 %v894_v37, %v892_v36  ;;  %v366_v48 = vrot.slane %v1733_v24, 1  ;;  %v233_v49 = vrot.slane %v1733_v24, 7 }
  0xeb   :  { %v1785_v50 = vmax.f32 %v180_v42, 0.0  ;;  %v201_v51 = vadd.f32 %v1426_v45, %v1620_v32  ;;  %295 = vrot.lane.b32.xlu0 %v1634_v46, %s1504_s15  ;;  %492 = vrot.lane.b32.xlu1 %v1655_v58, %s1507_s21  ;;  %v1794_v52 = vsel %vm372_vm2, %v363_v16, %v364_v43  ;;  %v1798_v53 = vsel %vm241_vm3, %v230_v17, %v231_v44  ;;  %v832_v4 = vld [vmem:[#allocation2 + $0x28] sm:$0xff] }
  0xec   :  { %v192_v57 = vpop.f32.mrf.mxu0  ;;  %1366 = vmatprep.mubr.msk.bf16.mxu0 %vm258_vm1, %v924_v47  ;;  %817 = vst.msk [vmem:[#allocation2 + $0x68] sm:$0xff] %vm258_vm1, %v1794_v52  ;;  %268 = vst.msk [vmem:[#allocation2 + $0x90] sm:$0xff] %vm258_vm1, %v1798_v53  ;;  %v367_v59 = vrot.slane %v1774_v40, 1  ;;  %v234_v62 = vrot.slane %v1774_v40, 7  ;;  %v896_v22 = vmul.f32 %v864_v6, %v832_v4 }
  0xed   :  { %v193_v1 = vadd.f32 %v192_v57, %v1620_v32  ;;  %v365_v8 = vrot.slane %v1785_v50, 1  ;;  %v232_v9 = vrot.slane %v1785_v50, 7  ;;  %v1816_v10 = vmax.f32 %v201_v51, 0.0 }
  0xee   :  { %v1427_v12 = vpop.f32.mrf.mxu0  ;;  %v1820_v15 = vsel %vm372_vm2, %v366_v48, %v367_v59  ;;  %v1824_v16 = vsel %vm241_vm3, %v233_v49, %v234_v62 }
  0xef   :  { %v1826_v17 = vmax.f32 %v193_v1, 0.0  ;;  %v204_v18 = vadd.f32 %v1427_v12, %v1620_v32  ;;  %746 = vrot.lane.b32.xlu0 %v1634_v46, %s1503_s14  ;;  %756 = vrot.lane.b32.xlu1 %v1649_v56, %s1503_s14  ;;  %v834_v19 = vld [vmem:[#allocation2 + $0x38] sm:$0xff]  ;;  %820 = vst.msk [vmem:[#allocation2 + $0x98] sm:$0xff] %vm258_vm1, %v1820_v15  ;;  %271 = vst.msk [vmem:[#allocation2 + $0xc0] sm:$0xff] %vm258_vm1, %v1824_v16  ;;  %v1839_v20 = vsel %vm372_vm2, %v364_v43, %v365_v8 }
  0xf0   :  { %v1843_v21 = vsel %vm241_vm3, %v231_v44, %v232_v9  ;;  %v898_v46 = vmul.f32 %v866_v7, %v834_v19  ;;  %v195_v23 = vpop.f32.mrf.mxu0  ;;  %818 = vst.msk [vmem:[#allocation2 + $0x78] sm:$0xff] %vm258_vm1, %v1839_v20  ;;  %v1851_v25 = vsel %vm372_vm2, %v365_v8, %v366_v48  ;;  %v1860_v35 = vsel %vm241_vm3, %v232_v9, %v233_v49  ;;  %v1476_v1 = vld [vmem:[%s2590_s2 + $0x38] sm:$0xff]   ;;  %v1477_v8 = vld [vmem:[%s2590_s2 + $0x30] sm:$0xff]   ;;  %v1479_v9 = vld [vmem:[%s2590_s2 + $0x20] sm:$0xff]  }
  0xf1   :  { %269 = vst.msk [vmem:[#allocation2 + $0xa0] sm:$0xff] %vm258_vm1, %v1843_v21  ;;  %v1853_v31 = vmax.f32 %v204_v18, 0.0  ;;  %v196_v33 = vadd.f32 %v195_v23, %v1620_v32  ;;  %819 = vst.msk [vmem:[#allocation2 + $0x88] sm:$0xff] %vm258_vm1, %v1851_v25  ;;  %v368_v37 = vrot.slane %v1826_v17, 1  ;;  %v235_v42 = vrot.slane %v1826_v17, 7 }
  0xf2   :  { %v926_v36 = vpack.c.bf16 %v898_v46, %v896_v22  ;;  %270 = vst.msk [vmem:[#allocation2 + $0xb0] sm:$0xff] %vm258_vm1, %v1860_v35  ;;  %v370_v43 = vrot.slane %v1816_v10, 1  ;;  %v237_v47 = vrot.slane %v1816_v10, 7 }
  0xf3   :  { %620 = vrot.lane.b32.xlu0 %v1646_v54, %s1508_s26  ;;  %305 = vrot.lane.b32.xlu1 %v1649_v56, %s1504_s15  ;;  %v1871_v32 = vmax.f32 %v196_v33, 0.0  ;;  %v238_v44 = vrot.slane %v1853_v31, 7  ;;  %v371_v45 = vrot.slane %v1853_v31, 1  ;;  %v1879_v48 = vsel %vm372_vm2, %v367_v59, %v368_v37 }
  0xf4   :  { %1367 = vmatprep.mubr.msk.bf16.mxu1 %vm258_vm1, %v926_v36  ;;  %v1883_v54 = vsel %vm241_vm3, %v234_v62, %v235_v42  ;;  %821 = vst.msk [vmem:[#allocation2 + $0xa8] sm:$0xff] %vm258_vm1, %v1879_v48  ;;  %v1510_v62 = vmov 0  }
  0xf5   :  { %v1889_v49 = vsel %vm241_vm3, %v238_v44, %v223_v60  ;;  %272 = vst.msk [vmem:[#allocation2 + $0xd0] sm:$0xff] %vm258_vm1, %v1883_v54  ;;  %v1899_v51 = vsel %vm372_vm2, %v371_v45, %v356_v55  ;;  %v1903_v57 = vsel %vm372_vm2, %v370_v43, %v371_v45  ;;  %v1907_v60 = vsel %vm241_vm3, %v237_v47, %v238_v44 }
  0xf6   :  { %260 = vst.msk [vmem:[#allocation2 + $0x10] sm:$0xff] %vm258_vm1, %v1889_v49  ;;  %825 = vst.msk [vmem:[#allocation2 + $0xe8] sm:$0xff] %vm258_vm1, %v1899_v51  ;;  %v369_v55 = vrot.slane %v1871_v32, 1  ;;  %v236_v59 = vrot.slane %v1871_v32, 7  ;;  %1446 = vmatprep.subr.bf16.mxu1 %v1510_v62  ;;  %1039 = vmatprep.subr.bf16.mxu0 %v1510_v62 }
  0xf7   :  { %824 = vst.msk [vmem:[#allocation2 + $0xd8] sm:$0xff] %vm258_vm1, %v1903_v57  ;;  %259 = vst.msk [vmem:[#allocation2] sm:$0xff] %vm258_vm1, %v1907_v60  ;;  %685 = vrot.lane.b32.xlu0 %v1655_v58, %s1509_s27  ;;  %409 = vrot.lane.b32.xlu1 %v1668_v63, %s1506_s20 }
  0xf8   :  { %v1929_v4 = vsel %vm372_vm2, %v368_v37, %v369_v55  ;;  %v1933_v6 = vsel %vm241_vm3, %v235_v42, %v236_v59  ;;  %v1937_v58 = vsel %vm372_vm2, %v369_v55, %v370_v43  ;;  %v1941_v7 = vsel %vm241_vm3, %v236_v59, %v237_v47  ;;  %1455 = vmatpush1.bf16.msra.mxu1 %v1476_v1  ;;  %v838_v55 = vld [vmem:[#allocation2 + $0x58] sm:$0xff] }
  0xf9   :  { %822 = vst.msk [vmem:[#allocation2 + $0xb8] sm:$0xff] %vm258_vm1, %v1929_v4  ;;  %273 = vst.msk [vmem:[#allocation2 + $0xe0] sm:$0xff] %vm258_vm1, %v1933_v6  ;;  %1040 = vmatpush1.bf16.msra.mxu0 %v1476_v1  ;;  %1447 = vmatprep.subr.bf16.mxu1 %v1510_v62  ;;  %v870_v59 = vld [vmem:[%s2589_s4 + $0x58] sm:$0xff]  ;;  %v863_v1 = vld [vmem:[%s2589_s4 + $0x20] sm:$0xff] }
  0xfa   :  { %823 = vst.msk [vmem:[#allocation2 + $0xc8] sm:$0xff] %vm258_vm1, %v1937_v58  ;;  %274 = vst.msk [vmem:[#allocation2 + $0xf0] sm:$0xff] %vm258_vm1, %v1941_v7  ;;  %1041 = vmatprep.subr.bf16.mxu0 %v1510_v62 }
  0xfb   :  { %563 = vrot.lane.b32.xlu0 %v1649_v56, %s1505_s16  ;;  %407 = vrot.lane.b32.xlu1 %v1676_v0, %s1506_s20  ;;  %v1478_v56 = vld [vmem:[%s2590_s2 + $0x28] sm:$0xff]  }
  0xfc   :  { %1456 = vmatpush1.bf16.msra.mxu1 %v1477_v8 }
  0xfd   :  { %1042 = vmatpush1.bf16.msra.mxu0 %v1477_v8  ;;  %1448 = vmatprep.subr.bf16.mxu1 %v1510_v62  ;;  %v865_v8 = vld [vmem:[%s2589_s4 + $0x30] sm:$0xff] }
  0xfe   :  { %1043 = vmatprep.subr.bf16.mxu0 %v1510_v62 }
  0xff   :  { %490 = vrot.lane.b32.xlu0 %v1684_v2, %s1507_s21  ;;  %488 = vrot.lane.b32.xlu1 %v1690_v3, %s1507_s21 }
 0x100   :  { %1457 = vmatpush1.bf16.msra.mxu1 %v1478_v56 }
 0x101   :  { %1044 = vmatpush1.bf16.msra.mxu0 %v1478_v56  ;;  %1449 = vmatprep.subr.bf16.mxu1 %v1510_v62 }
 0x102   :  { %1045 = vmatprep.subr.bf16.mxu0 %v1510_v62 }
 0x103   :  { %616 = vrot.lane.b32.xlu0 %v1676_v0, %s1508_s26  ;;  %618 = vrot.lane.b32.xlu1 %v1668_v63, %s1508_s26  ;;  %v1480_v63 = vld [vmem:[%s2590_s2 + $0x18] sm:$0xff]   ;;  %v1481_v0 = vld [vmem:[%s2590_s2 + $0x10] sm:$0xff]  }
 0x104   :  { %1458 = vmatpush1.bf16.msra.mxu1 %v1479_v9 }
 0x105   :  { %1046 = vmatpush1.bf16.msra.mxu0 %v1479_v9  ;;  %1450 = vmatprep.subr.bf16.mxu1 %v1510_v62 }
 0x106   :  { %1047 = vmatprep.subr.bf16.mxu0 %v1510_v62 }
 0x107   :  { %681 = vrot.lane.b32.xlu0 %v1690_v3, %s1509_s27  ;;  %683 = vrot.lane.b32.xlu1 %v1684_v2, %s1509_s27  ;;  %v1482_v2 = vld [vmem:[%s2590_s2 + $0x8] sm:$0xff]   ;;  %v1484_v3 = vld [vmem:[%s2590_s2 + $0x40] sm:$0xff]  }
 0x108   :  { %1459 = vmatpush1.bf16.msra.mxu1 %v1480_v63 }
 0x109   :  { %1048 = vmatpush1.bf16.msra.mxu0 %v1480_v63  ;;  %1451 = vmatprep.subr.bf16.mxu1 %v1510_v62 }
 0x10a   :  { %1049 = vmatprep.subr.bf16.mxu0 %v1510_v62 }
 0x10b   :  { %559 = vrot.lane.b32.xlu0 %v1659_v61, %s1505_s16  ;;  %752 = vrot.lane.b32.xlu1 %v1659_v61, %s1503_s14 }
 0x10c   :  { %1460 = vmatpush1.bf16.msra.mxu1 %v1481_v0 }
 0x10d   :  { %1050 = vmatpush1.bf16.msra.mxu0 %v1481_v0  ;;  %1452 = vmatprep.subr.bf16.mxu1 %v1510_v62 }
 0x10e   :  { %1051 = vmatprep.subr.bf16.mxu0 %v1510_v62 }
 0x10f   :  { %758 = vrot.lane.b32.xlu0 %v1693_v5, %s1503_s14  ;;  %301 = vrot.lane.b32.xlu1 %v1659_v61, %s1504_s15  ;;  %v1483_v61 = vld [vmem:[%s2590_s2] sm:$0xff]  }
 0x110   :  { %1461 = vmatpush1.bf16.msra.mxu1 %v1482_v2 }
 0x111   :  { %1052 = vmatpush1.bf16.msra.mxu0 %v1482_v2  ;;  %1453 = vmatprep.subr.bf16.mxu1 %v1510_v62 }
 0x112   :  { %1053 = vmatprep.subr.bf16.mxu0 %v1510_v62 }
 0x113   :  { %307 = vrot.lane.b32.xlu0 %v1693_v5, %s1504_s15  ;;  %565 = vrot.lane.b32.xlu1 %v1693_v5, %s1505_s16 }
 0x114   :  { %1462 = vmatpush1.bf16.msra.mxu1 %v1483_v61 }
 0x115   :  { %1054 = vmatpush1.bf16.msra.mxu0 %v1483_v61  ;;  %1454 = vmatprep.subr.bf16.mxu1 %v1510_v62 }
 0x116   :  { %1069 = vmatprep.subr.bf16.mxu0 %v1510_v62 }
 0x117   :  { %413 = vrot.lane.b32.xlu0 %v1712_v13, %s1506_s20  ;;  %622 = vrot.lane.b32.xlu1 %v1712_v13, %s1508_s26 }
 0x118   :  { %1463 = vmatpush2.bf16.msra.mxu1 %v1484_v3 }
 0x119   :  { %1070 = vmatpush2.bf16.msra.mxu0 %v1484_v3  ;;  %v902_v3 = vmul.f32 %v870_v59, %v838_v55  ;;  %v871_v55 = vld [vmem:[%s2589_s4 + $0x60] sm:$0xff]  ;;  %v873_v59 = vld [vmem:[%s2589_s4 + $0x70] sm:$0xff] }
 0x11b   :  { %494 = vrot.lane.b32.xlu0 %v1716_v14, %s1507_s21  ;;  %687 = vrot.lane.b32.xlu1 %v1716_v14, %s1509_s27 }
 0x11f   :  { %754 = vrot.lane.b32.xlu0 %v1703_v11, %s1503_s14  ;;  %561 = vrot.lane.b32.xlu1 %v1703_v11, %s1505_s16 }
 0x123   :  { %303 = vrot.lane.b32.xlu0 %v1703_v11, %s1504_s15  ;;  %419 = vrot.lane.b32.xlu1 %v1737_v26, %s1506_s20 }
 0x127   :  { %628 = vrot.lane.b32.xlu0 %v1737_v26, %s1508_s26  ;;  %500 = vrot.lane.b32.xlu1 %v1741_v27, %s1507_s21 }
 0x12b   :  { %693 = vrot.lane.b32.xlu0 %v1741_v27, %s1509_s27  ;;  %764 = vrot.lane.b32.xlu1 %v1733_v24, %s1503_s14 }
 0x12f   :  { %571 = vrot.lane.b32.xlu0 %v1733_v24, %s1505_s16  ;;  %313 = vrot.lane.b32.xlu1 %v1733_v24, %s1504_s15 }
 0x133   :  { %624 = vrot.lane.b32.xlu0 %v1745_v28, %s1508_s26  ;;  %415 = vrot.lane.b32.xlu1 %v1745_v28, %s1506_s20 }
 0x137   :  { %689 = vrot.lane.b32.xlu0 %v1760_v34, %s1509_s27  ;;  %496 = vrot.lane.b32.xlu1 %v1760_v34, %s1507_s21 }
 0x13b   :  { %417 = vrot.lane.b32.xlu0 %v1768_v38, %s1506_s20  ;;  %626 = vrot.lane.b32.xlu1 %v1768_v38, %s1508_s26 }
 0x13f   :  { %498 = vrot.lane.b32.xlu0 %v1772_v39, %s1507_s21  ;;  %691 = vrot.lane.b32.xlu1 %v1772_v39, %s1509_s27 }
 0x143   :  { %567 = vrot.lane.b32.xlu0 %v1747_v30, %s1505_s16  ;;  %760 = vrot.lane.b32.xlu1 %v1747_v30, %s1503_s14 }
 0x147   :  { %766 = vrot.lane.b32.xlu0 %v1774_v40, %s1503_s14  ;;  %309 = vrot.lane.b32.xlu1 %v1747_v30, %s1504_s15 }
 0x149   :  { %v2072_v5 = vpop.permute.xlu1 %748  ;;  %v298_v11 = vpop.permute.xlu0 %297 }
 0x14a   :  { %343 = vst.msk [vmem:[#allocation2 + $0x30] sm:$0xff] %vm339_vm4, %v298_v11 }
 0x14b   :  { %315 = vrot.lane.b32.xlu0 %v1774_v40, %s1504_s15  ;;  %573 = vrot.lane.b32.xlu1 %v1774_v40, %s1505_s16 }
 0x14d   :  { %v556_v13 = vpop.permute.xlu0 %555  ;;  %v294_v14 = vpop.permute.xlu1 %293 }
 0x14e   :  { %341 = vst.msk [vmem:[#allocation2 + $0x10] sm:$0xff] %vm339_vm4, %v294_v14 }
 0x14f   :  { %421 = vrot.lane.b32.xlu0 %v1794_v52, %s1506_s20  ;;  %630 = vrot.lane.b32.xlu1 %v1794_v52, %s1508_s26 }
 0x151   :  { %v2084_v24 = vpop.permute.xlu0 %551  ;;  %v558_v26 = vpop.permute.xlu1 %557 }
 0x153   :  { %502 = vrot.lane.b32.xlu0 %v1798_v53, %s1507_s21  ;;  %695 = vrot.lane.b32.xlu1 %v1798_v53, %s1509_s27 }
 0x155   :  { %v751_v27 = vpop.permute.xlu0 %750  ;;  %v554_v28 = vpop.permute.xlu1 %553 }
 0x157   :  { %762 = vrot.lane.b32.xlu0 %v1785_v50, %s1503_s14  ;;  %569 = vrot.lane.b32.xlu1 %v1785_v50, %s1505_s16 }
 0x159   :  { %v300_v30 = vpop.permute.xlu0 %299  ;;  %v412_v34 = vpop.permute.xlu1 %411 }
 0x15a   :  { %344 = vst.msk [vmem:[#allocation2 + $0x40] sm:$0xff] %vm339_vm4, %v300_v30 }
 0x15b   :  { %457 = vst.msk [vmem:[#allocation2 + $0x30] sm:$0xff] %vm453_vm5, %v412_v34  ;;  %311 = vrot.lane.b32.xlu0 %v1785_v50, %s1504_s15  ;;  %427 = vrot.lane.b32.xlu1 %v1820_v15, %s1506_s20 }
 0x15d   :  { %v296_v38 = vpop.permute.xlu0 %295  ;;  %v493_v39 = vpop.permute.xlu1 %492 }
 0x15e   :  { %342 = vst.msk [vmem:[#allocation2 + $0x20] sm:$0xff] %vm339_vm4, %v296_v38 }
 0x15f   :  { %538 = vst.msk [vmem:[#allocation2 + $0x30] sm:$0xff] %vm534_vm6, %v493_v39  ;;  %636 = vrot.lane.b32.xlu0 %v1820_v15, %s1508_s26  ;;  %508 = vrot.lane.b32.xlu1 %v1824_v16, %s1507_s21 }
 0x160   :  { %603 = vst.msk [vmem:[#allocation2 + $0x30] sm:$0xff] %vm599_vm7, %v558_v26 }
 0x161   :  { %v2107_v40 = vpop.permute.xlu0 %746  ;;  %v2109_v50 = vpop.permute.xlu1 %756 }
 0x163   :  { %701 = vrot.lane.b32.xlu0 %v1824_v16, %s1509_s27  ;;  %772 = vrot.lane.b32.xlu1 %v1816_v10, %s1503_s14 }
 0x165   :  { %v621_v52 = vpop.permute.xlu0 %620  ;;  %v306_v53 = vpop.permute.xlu1 %305 }
 0x166   :  { %347 = vst.msk [vmem:[#allocation2 + $0x70] sm:$0xff] %vm339_vm4, %v306_v53  ;;  %v869_v53 = vld [vmem:[%s2589_s4 + $0x50] sm:$0xff] }
 0x167   :  { %632 = vrot.lane.b32.xlu0 %v1839_v20, %s1508_s26  ;;  %321 = vrot.lane.b32.xlu1 %v1816_v10, %s1504_s15 }
 0x169   :  { %v686_v12 = vpop.permute.xlu0 %685  ;;  %v410_v15 = vpop.permute.xlu1 %409 }
 0x16a   :  { %456 = vst.msk [vmem:[#allocation2 + $0x20] sm:$0xff] %vm453_vm5, %v410_v15 }
 0x16b   :  { %697 = vrot.lane.b32.xlu0 %v1843_v21, %s1509_s27  ;;  %423 = vrot.lane.b32.xlu1 %v1839_v20, %s1506_s20 }
 0x16d   :  { %v2125_v16 = vpop.permute.xlu0 %563  ;;  %v408_v18 = vpop.permute.xlu1 %407 }
 0x16e   :  { %455 = vst.msk [vmem:[#allocation2 + $0x10] sm:$0xff] %vm453_vm5, %v408_v18 }
 0x16f   :  { %425 = vrot.lane.b32.xlu0 %v1851_v25, %s1506_s20  ;;  %504 = vrot.lane.b32.xlu1 %v1843_v21, %s1507_s21 }
 0x171   :  { %v491_v19 = vpop.permute.xlu0 %490  ;;  %v489_v22 = vpop.permute.xlu1 %488 }
 0x172   :  { %537 = vst.msk [vmem:[#allocation2 + $0x20] sm:$0xff] %vm534_vm6, %v491_v19  ;;  %536 = vst.msk [vmem:[#allocation2 + $0x10] sm:$0xff] %vm534_vm6, %v489_v22 }
 0x173   :  { %602 = vst.msk [vmem:[#allocation2 + $0x20] sm:$0xff] %vm599_vm7, %v556_v13  ;;  %601 = vst.msk [vmem:[#allocation2 + $0x10] sm:$0xff] %vm599_vm7, %v554_v28  ;;  %506 = vrot.lane.b32.xlu0 %v1860_v35, %s1507_s21  ;;  %634 = vrot.lane.b32.xlu1 %v1851_v25, %s1508_s26 }
 0x174   :  { %667 = vst.msk [vmem:[#allocation2 + $0x20] sm:$0xff] %vm664_vm8, %v621_v52  ;;  %v867_v52 = vld [vmem:[%s2589_s4 + $0x40] sm:$0xff] }
 0x175   :  { %732 = vst.msk [vmem:[#allocation2 + $0x20] sm:$0xff] %vm729_vm9, %v686_v12  ;;  %v2142_v20 = vpop.permute.xlu0 %616  ;;  %v619_v21 = vpop.permute.xlu1 %618 }
 0x176   :  { %797 = vst.msk [vmem:[#allocation2 + $0x20] sm:$0xff] %vm794_vm10, %v751_v27 }
 0x177   :  { %666 = vst.msk [vmem:[#allocation2 + $0x10] sm:$0xff] %vm664_vm8, %v619_v21  ;;  %575 = vrot.lane.b32.xlu0 %v1826_v17, %s1505_s16  ;;  %699 = vrot.lane.b32.xlu1 %v1860_v35, %s1509_s27 }
 0x179   :  { %v2150_v46 = vpop.permute.xlu0 %681  ;;  %v684_v23 = vpop.permute.xlu1 %683 }
 0x17a   :  { %731 = vst.msk [vmem:[#allocation2 + $0x10] sm:$0xff] %vm729_vm9, %v684_v23 }
 0x17b   :  { %796 = vst.msk [vmem:[#allocation2 + $0x10] sm:$0xff] %vm794_vm10, %v2072_v5  ;;  %291 = vrot.lane.b32.xlu0 %v1853_v31, %s1504_s15  ;;  %768 = vrot.lane.b32.xlu1 %v1826_v17, %s1503_s14 }
 0x17d   :  { %v560_v25 = vpop.permute.xlu0 %559  ;;  %v753_v33 = vpop.permute.xlu1 %752  ;;  %v831_v62 = vld [vmem:[#allocation2 + $0x20] sm:$0xff] }
 0x17e   :  { %v895_v2 = vmul.f32 %v863_v1, %v831_v62 }
 0x17f   :  { %429 = vrot.lane.b32.xlu0 %v1879_v48, %s1506_s20  ;;  %317 = vrot.lane.b32.xlu1 %v1826_v17, %s1504_s15 }
 0x181   :  { %v2163_v35 = vpop.permute.xlu0 %758  ;;  %v302_v36 = vpop.permute.xlu1 %301 }
 0x182   :  { %345 = vst.msk [vmem:[#allocation2 + $0x50] sm:$0xff] %vm339_vm4, %v302_v36 }
 0x183   :  { %510 = vrot.lane.b32.xlu0 %v1883_v54, %s1507_s21  ;;  %638 = vrot.lane.b32.xlu1 %v1879_v48, %s1508_s26 }
 0x185   :  { %v308_v37 = vpop.permute.xlu0 %307  ;;  %v566_v42 = vpop.permute.xlu1 %565 }
 0x186   :  { %348 = vst.msk [vmem:[#allocation2 + $0x80] sm:$0xff] %vm339_vm4, %v308_v37 }
 0x187   :  { %770 = vrot.lane.b32.xlu0 %v1871_v32, %s1503_s14  ;;  %703 = vrot.lane.b32.xlu1 %v1883_v54, %s1509_s27  ;;  %v836_v54 = vld [vmem:[#allocation2 + $0x48] sm:$0xff] }
 0x189   :  { %v414_v17 = vpop.permute.xlu0 %413  ;;  %v623_v43 = vpop.permute.xlu1 %622 }
 0x18a   :  { %458 = vst.msk [vmem:[#allocation2 + $0x40] sm:$0xff] %vm453_vm5, %v414_v17 }
 0x18b   :  { %668 = vst.msk [vmem:[#allocation2 + $0x30] sm:$0xff] %vm664_vm8, %v623_v43  ;;  %319 = vrot.lane.b32.xlu0 %v1871_v32, %s1504_s15  ;;  %577 = vrot.lane.b32.xlu1 %v1871_v32, %s1505_s16  ;;  %v868_v32 = vld [vmem:[%s2589_s4 + $0x48] sm:$0xff] }
 0x18c   :  { %v900_v0 = vmul.f32 %v868_v32, %v836_v54  ;;  %v878_v32 = vld [vmem:[%s2589_s4 + $0x98] sm:$0xff] }
 0x18d   :  { %v495_v44 = vpop.permute.xlu0 %494  ;;  %v688_v45 = vpop.permute.xlu1 %687 }
 0x18e   :  { %539 = vst.msk [vmem:[#allocation2 + $0x40] sm:$0xff] %vm534_vm6, %v495_v44 }
 0x18f   :  { %733 = vst.msk [vmem:[#allocation2 + $0x30] sm:$0xff] %vm729_vm9, %v688_v45  ;;  %405 = vrot.lane.b32.xlu0 %v1899_v51, %s1506_s20  ;;  %581 = vrot.lane.b32.xlu1 %v1853_v31, %s1505_s16  ;;  %v876_v45 = vld [vmem:[%s2589_s4 + $0x88] sm:$0xff] }
 0x190   :  { %604 = vst.msk [vmem:[#allocation2 + $0x40] sm:$0xff] %vm599_vm7, %v560_v25 }
 0x191   :  { %798 = vst.msk [vmem:[#allocation2 + $0x30] sm:$0xff] %vm794_vm10, %v753_v33  ;;  %v755_v47 = vpop.permute.xlu0 %754  ;;  %v562_v48 = vpop.permute.xlu1 %561 }
 0x193   :  { %486 = vrot.lane.b32.xlu0 %v1889_v49, %s1507_s21  ;;  %435 = vrot.lane.b32.xlu1 %v1903_v57, %s1506_s20 }
 0x195   :  { %v304_v56 = vpop.permute.xlu0 %303  ;;  %v420_v9 = vpop.permute.xlu1 %419 }
 0x196   :  { %346 = vst.msk [vmem:[#allocation2 + $0x60] sm:$0xff] %vm339_vm4, %v304_v56 }
 0x197   :  { %461 = vst.msk [vmem:[#allocation2 + $0x70] sm:$0xff] %vm453_vm5, %v420_v9  ;;  %579 = vrot.lane.b32.xlu0 %v1816_v10, %s1505_s16  ;;  %516 = vrot.lane.b32.xlu1 %v1907_v60, %s1507_s21  ;;  %v928_v10 = vpack.c.bf16 %v902_v3, %v900_v0 }
 0x198   :  { %v833_v63 = vld [vmem:[#allocation2 + $0x30] sm:$0xff] }
 0x199   :  { %v897_v61 = vmul.f32 %v865_v8, %v833_v63  ;;  %v629_v5 = vpop.permute.xlu0 %628  ;;  %v501_v11 = vpop.permute.xlu1 %500 }
 0x19a   :  { %542 = vst.msk [vmem:[#allocation2 + $0x70] sm:$0xff] %vm534_vm6, %v501_v11 }
 0x19b   :  { %v925_v13 = vpack.c.bf16 %v897_v61, %v895_v2  ;;  %607 = vst.msk [vmem:[#allocation2 + $0x70] sm:$0xff] %vm599_vm7, %v566_v42  ;;  %644 = vrot.lane.b32.xlu0 %v1903_v57, %s1508_s26  ;;  %431 = vrot.lane.b32.xlu1 %v1929_v4, %s1506_s20 }
 0x19d   :  { %1080 = vmatmul.mubr.bf16.vlgmr.msra.gmra.mxu1 %v925_v13  ;;  %v694_v14 = vpop.permute.xlu0 %693  ;;  %v2218_v26 = vpop.permute.xlu1 %764 }
 0x19e   :  { %1368 = vmatprep.mubr.msk.bf16.mxu1 %vm258_vm1, %v928_v10 }
 0x19f   :  { %640 = vrot.lane.b32.xlu0 %v1929_v4, %s1508_s26  ;;  %512 = vrot.lane.b32.xlu1 %v1933_v6, %s1507_s21 }
 0x1a1   :  { %v2224_v27 = vpop.permute.xlu0 %571  ;;  %v314_v28 = vpop.permute.xlu1 %313 }
 0x1a2   :  { %351 = vst.msk [vmem:[#allocation2 + $0xb0] sm:$0xff] %vm339_vm4, %v314_v28 }
 0x1a3   :  { %705 = vrot.lane.b32.xlu0 %v1933_v6, %s1509_s27  ;;  %642 = vrot.lane.b32.xlu1 %v1937_v58, %s1508_s26 }
 0x1a5   :  { %v625_v57 = vpop.permute.xlu0 %624  ;;  %v416_v30 = vpop.permute.xlu1 %415 }
 0x1a6   :  { %669 = vst.msk [vmem:[#allocation2 + $0x40] sm:$0xff] %vm664_vm8, %v625_v57 }
 0x1a7   :  { %459 = vst.msk [vmem:[#allocation2 + $0x50] sm:$0xff] %vm453_vm5, %v416_v30  ;;  %709 = vrot.lane.b32.xlu0 %v1907_v60, %s1509_s27  ;;  %707 = vrot.lane.b32.xlu1 %v1941_v7, %s1509_s27 }
 0x1a9   :  { %v690_v4 = vpop.permute.xlu0 %689  ;;  %v497_v34 = vpop.permute.xlu1 %496 }
 0x1aa   :  { %734 = vst.msk [vmem:[#allocation2 + $0x40] sm:$0xff] %vm729_vm9, %v690_v4 }
 0x1ab   :  { %540 = vst.msk [vmem:[#allocation2 + $0x50] sm:$0xff] %vm534_vm6, %v497_v34  ;;  %433 = vrot.lane.b32.xlu0 %v1937_v58, %s1506_s20  ;;  %646 = vrot.lane.b32.xlu1 %v1899_v51, %s1508_s26  ;;  %v872_v58 = vld [vmem:[%s2589_s4 + $0x68] sm:$0xff] }
 0x1ac   :  { %799 = vst.msk [vmem:[#allocation2 + $0x40] sm:$0xff] %vm794_vm10, %v755_v47  ;;  %v844_v47 = vld [vmem:[#allocation2 + $0x88] sm:$0xff] }
 0x1ad   :  { %605 = vst.msk [vmem:[#allocation2 + $0x50] sm:$0xff] %vm599_vm7, %v562_v48  ;;  %v418_v60 = vpop.permute.xlu0 %417  ;;  %v627_v6 = vpop.permute.xlu1 %626  ;;  %v846_v48 = vld [vmem:[#allocation2 + $0x98] sm:$0xff]  ;;  %v908_v56 = vmul.f32 %v876_v45, %v844_v47  ;;  %v879_v45 = vld [vmem:[%s2589_s4 + $0xa0] sm:$0xff]  ;;  %v881_v47 = vld [vmem:[%s2589_s4 + $0xb0] sm:$0xff] }
 0x1ae   :  { %460 = vst.msk [vmem:[#allocation2 + $0x60] sm:$0xff] %vm453_vm5, %v418_v60  ;;  %v910_v9 = vmul.f32 %v878_v32, %v846_v48 }
 0x1af   :  { %670 = vst.msk [vmem:[#allocation2 + $0x50] sm:$0xff] %vm664_vm8, %v627_v6  ;;  %514 = vrot.lane.b32.xlu0 %v1941_v7, %s1507_s21  ;;  %711 = vrot.lane.b32.xlu1 %v1889_v49, %s1509_s27  ;;  %v840_v7 = vld [vmem:[#allocation2 + $0x68] sm:$0xff] }
 0x1b0   :  { %v904_v18 = vmul.f32 %v872_v58, %v840_v7  ;;  %v850_v58 = vld [vmem:[#allocation2 + $0xb8] sm:$0xff] }
 0x1b1   :  { %v499_v38 = vpop.permute.xlu0 %498  ;;  %v692_v39 = vpop.permute.xlu1 %691  ;;  %v882_v7 = vld [vmem:[%s2589_s4 + $0xb8] sm:$0xff] }
 0x1b2   :  { %541 = vst.msk [vmem:[#allocation2 + $0x60] sm:$0xff] %vm534_vm6, %v499_v38 }
 0x1b3   :  { %735 = vst.msk [vmem:[#allocation2 + $0x50] sm:$0xff] %vm729_vm9, %v692_v39  ;;  %774 = vrot.lane.b32.xlu0 %v1853_v31, %s1503_s14  ;;  %776 = vrot.lane.b32.xlu1 %v1627_v41, %s1503_s14  ;;  %v874_v31 = vld [vmem:[%s2589_s4 + $0x78] sm:$0xff]  ;;  %v835_v41 = vld [vmem:[#allocation2 + $0x40] sm:$0xff] }
 0x1b4   :  { %606 = vst.msk [vmem:[#allocation2 + $0x60] sm:$0xff] %vm599_vm7, %v2125_v16  ;;  %v899_v22 = vmul.f32 %v867_v52, %v835_v41 }
 0x1b5   :  { %800 = vst.msk [vmem:[#allocation2 + $0x50] sm:$0xff] %vm794_vm10, %v2109_v50  ;;  %v568_v49 = vpop.permute.xlu0 %567  ;;  %v761_v51 = vpop.permute.xlu1 %760  ;;  %v842_v50 = vld [vmem:[#allocation2 + $0x78] sm:$0xff] }
 0x1b6   :  { %671 = vst.msk [vmem:[#allocation2 + $0x60] sm:$0xff] %vm664_vm8, %v629_v5  ;;  %v906_v19 = vmul.f32 %v874_v31, %v842_v50  ;;  %v932_v5 = vpack.c.bf16 %v910_v9, %v908_v56  ;;  %v875_v31 = vld [vmem:[%s2589_s4 + $0x80] sm:$0xff] }
 0x1b7   :  { %736 = vst.msk [vmem:[#allocation2 + $0x60] sm:$0xff] %vm729_vm9, %v694_v14 }
 0x1b8   :  { %801 = vst.msk [vmem:[#allocation2 + $0x60] sm:$0xff] %vm794_vm10, %v2163_v35  ;;  %v930_v35 = vpack.c.bf16 %v906_v19, %v904_v18 }
 0x1b9   :  { %v2277_v12 = vpop.permute.xlu0 %766  ;;  %v310_v15 = vpop.permute.xlu1 %309 }
 0x1ba   :  { %349 = vst.msk [vmem:[#allocation2 + $0x90] sm:$0xff] %vm339_vm4, %v310_v15  ;;  %v914_v15 = vmul.f32 %v882_v7, %v850_v58  ;;  %v858_v7 = vld [vmem:[#allocation2 + $0xf8] sm:$0xff] }
 0x1bc   :  { %v837_v16 = vld [vmem:[#allocation2 + $0x50] sm:$0xff] }
 0x1bd   :  { %v901_v21 = vmul.f32 %v869_v53, %v837_v16  ;;  %v316_v23 = vpop.permute.xlu0 %315  ;;  %v574_v25 = vpop.permute.xlu1 %573 }
 0x1be   :  { %352 = vst.msk [vmem:[#allocation2 + $0xc0] sm:$0xff] %vm339_vm4, %v316_v23 }
 0x1bf   :  { %v927_v33 = vpack.c.bf16 %v901_v21, %v899_v22  ;;  %v839_v54 = vld [vmem:[#allocation2 + $0x60] sm:$0xff] }
 0x1c0   :  { %v903_v63 = vmul.f32 %v871_v55, %v839_v54 }
 0x1c1   :  { %1088 = vmatmul.mubr.bf16.gmra.mxu1 %v927_v33  ;;  %v422_v36 = vpop.permute.xlu0 %421  ;;  %v631_v37 = vpop.permute.xlu1 %630 }
 0x1c2   :  { %1369 = vmatprep.mubr.msk.bf16.mxu1 %vm258_vm1, %v930_v35  ;;  %462 = vst.msk [vmem:[#allocation2 + $0x80] sm:$0xff] %vm453_vm5, %v422_v36 }
 0x1c3   :  { %672 = vst.msk [vmem:[#allocation2 + $0x70] sm:$0xff] %vm664_vm8, %v631_v37  ;;  %v884_v37 = vld [vmem:[%s2589_s4 + $0xc8] sm:$0xff] }
 0x1c5   :  { %v503_v42 = vpop.permute.xlu0 %502  ;;  %v696_v17 = vpop.permute.xlu1 %695 }
 0x1c6   :  { %543 = vst.msk [vmem:[#allocation2 + $0x80] sm:$0xff] %vm534_vm6, %v503_v42  ;;  %v852_v42 = vld [vmem:[#allocation2 + $0xc8] sm:$0xff] }
 0x1c7   :  { %737 = vst.msk [vmem:[#allocation2 + $0x70] sm:$0xff] %vm729_vm9, %v696_v17  ;;  %v854_v17 = vld [vmem:[#allocation2 + $0xd8] sm:$0xff]  ;;  %v916_v55 = vmul.f32 %v884_v37, %v852_v42  ;;  %v2422_v37 = vld [vmem:[%s2588_s5] sm:$0x7] }
 0x1c8   :  { %608 = vst.msk [vmem:[#allocation2 + $0x80] sm:$0xff] %vm599_vm7, %v568_v49 }
 0x1c9   :  { %802 = vst.msk [vmem:[#allocation2 + $0x70] sm:$0xff] %vm794_vm10, %v761_v51  ;;  %v763_v43 = vpop.permute.xlu0 %762  ;;  %v570_v44 = vpop.permute.xlu1 %569  ;;  %v848_v51 = vld [vmem:[#allocation2 + $0xa8] sm:$0xff] }
 0x1cd   :  { %v312_v62 = vpop.permute.xlu0 %311  ;;  %v428_v1 = vpop.permute.xlu1 %427 }
 0x1ce   :  { %350 = vst.msk [vmem:[#allocation2 + $0xa0] sm:$0xff] %vm339_vm4, %v312_v62 }
 0x1cf   :  { %465 = vst.msk [vmem:[#allocation2 + $0xb0] sm:$0xff] %vm453_vm5, %v428_v1 }
 0x1d0   :  { %v841_v8 = vld [vmem:[#allocation2 + $0x70] sm:$0xff] }
 0x1d1   :  { %v905_v0 = vmul.f32 %v873_v59, %v841_v8  ;;  %v637_v2 = vpop.permute.xlu0 %636  ;;  %v509_v61 = vpop.permute.xlu1 %508 }
 0x1d2   :  { %546 = vst.msk [vmem:[#allocation2 + $0xb0] sm:$0xff] %vm534_vm6, %v509_v61 }
 0x1d3   :  { %v929_v3 = vpack.c.bf16 %v905_v0, %v903_v63  ;;  %611 = vst.msk [vmem:[#allocation2 + $0xb0] sm:$0xff] %vm599_vm7, %v574_v25 }
 0x1d5   :  { %1096 = vmatmul.mubr.bf16.gmra.mxu1 %v929_v3  ;;  %v702_v11 = vpop.permute.xlu0 %701  ;;  %v2305_v13 = vpop.permute.xlu1 %772  ;;  %v829_v3 = vld [vmem:[#allocation2 + $0x10] sm:$0xff] }
 0x1d6   :  { %1370 = vmatprep.mubr.msk.bf16.mxu1 %vm258_vm1, %v932_v5 }
 0x1d9   :  { %v633_v10 = vpop.permute.xlu0 %632  ;;  %v322_v14 = vpop.permute.xlu1 %321 }
 0x1da   :  { %673 = vst.msk [vmem:[#allocation2 + $0x80] sm:$0xff] %vm664_vm8, %v633_v10 }
 0x1db   :  { %355 = vst.msk [vmem:[#allocation2 + $0xf0] sm:$0xff] %vm339_vm4, %v322_v14 }
 0x1dd   :  { %v698_v28 = vpop.permute.xlu0 %697  ;;  %v424_v57 = vpop.permute.xlu1 %423 }
 0x1de   :  { %738 = vst.msk [vmem:[#allocation2 + $0x80] sm:$0xff] %vm729_vm9, %v698_v28 }
 0x1df   :  { %463 = vst.msk [vmem:[#allocation2 + $0x90] sm:$0xff] %vm453_vm5, %v424_v57 }
 0x1e0   :  { %803 = vst.msk [vmem:[#allocation2 + $0x80] sm:$0xff] %vm794_vm10, %v763_v43  ;;  %v886_v43 = vld [vmem:[%s2589_s4 + $0xd8] sm:$0xff] }
 0x1e1   :  { %v426_v30 = vpop.permute.xlu0 %425  ;;  %v505_v4 = vpop.permute.xlu1 %504  ;;  %v918_v59 = vmul.f32 %v886_v43, %v854_v17 }
 0x1e2   :  { %464 = vst.msk [vmem:[#allocation2 + $0xa0] sm:$0xff] %vm453_vm5, %v426_v30 }
 0x1e3   :  { %544 = vst.msk [vmem:[#allocation2 + $0x90] sm:$0xff] %vm534_vm6, %v505_v4  ;;  %v936_v63 = vpack.c.bf16 %v918_v59, %v916_v55 }
 0x1e4   :  { %609 = vst.msk [vmem:[#allocation2 + $0x90] sm:$0xff] %vm599_vm7, %v570_v44 }
 0x1e5   :  { %v507_v34 = vpop.permute.xlu0 %506  ;;  %v635_v60 = vpop.permute.xlu1 %634 }
 0x1e6   :  { %545 = vst.msk [vmem:[#allocation2 + $0xa0] sm:$0xff] %vm534_vm6, %v507_v34 }
 0x1e7   :  { %674 = vst.msk [vmem:[#allocation2 + $0x90] sm:$0xff] %vm664_vm8, %v635_v60  ;;  %v843_v50 = vld [vmem:[#allocation2 + $0x80] sm:$0xff] }
 0x1e8   :  { %610 = vst.msk [vmem:[#allocation2 + $0xa0] sm:$0xff] %vm599_vm7, %v2224_v27  ;;  %v880_v27 = vld [vmem:[%s2589_s4 + $0xa8] sm:$0xff]  ;;  %v907_v16 = vmul.f32 %v875_v31, %v843_v50  ;;  %v890_v50 = vld [vmem:[%s2589_s4 + $0xf8] sm:$0xff] }
 0x1e9   :  { %675 = vst.msk [vmem:[#allocation2 + $0xa0] sm:$0xff] %vm664_vm8, %v637_v2  ;;  %v576_v6 = vpop.permute.xlu0 %575  ;;  %v700_v38 = vpop.permute.xlu1 %699 }
 0x1ea   :  { %740 = vst.msk [vmem:[#allocation2 + $0xa0] sm:$0xff] %vm729_vm9, %v702_v11  ;;  %739 = vst.msk [vmem:[#allocation2 + $0x90] sm:$0xff] %vm729_vm9, %v700_v38  ;;  %v856_v38 = vld [vmem:[#allocation2 + $0xe8] sm:$0xff] }
 0x1eb   :  { %805 = vst.msk [vmem:[#allocation2 + $0xa0] sm:$0xff] %vm794_vm10, %v2277_v12  ;;  %804 = vst.msk [vmem:[#allocation2 + $0x90] sm:$0xff] %vm794_vm10, %v2218_v26  ;;  %v877_v26 = vld [vmem:[%s2589_s4 + $0x90] sm:$0xff]  ;;  %v912_v12 = vmul.f32 %v880_v27, %v848_v51  ;;  %v883_v27 = vld [vmem:[%s2589_s4 + $0xc0] sm:$0xff] }
 0x1ed   :  { %v292_v39 = vpop.permute.xlu0 %291  ;;  %v769_v49 = vpop.permute.xlu1 %768  ;;  %v934_v23 = vpack.c.bf16 %v914_v15, %v912_v12 }
 0x1ee   :  { %340 = vst.msk [vmem:[#allocation2] sm:$0xff] %vm339_vm4, %v292_v39  ;;  %v888_v39 = vld [vmem:[%s2589_s4 + $0xe8] sm:$0xff] }
 0x1f1   :  { %v430_v41 = vpop.permute.xlu0 %429  ;;  %v318_v52 = vpop.permute.xlu1 %317 }
 0x1f2   :  { %466 = vst.msk [vmem:[#allocation2 + $0xc0] sm:$0xff] %vm453_vm5, %v430_v41  ;;  %v845_v53 = vld [vmem:[#allocation2 + $0x90] sm:$0xff]  ;;  %v847_v44 = vld [vmem:[#allocation2 + $0xa0] sm:$0xff] }
 0x1f3   :  { %353 = vst.msk [vmem:[#allocation2 + $0xd0] sm:$0xff] %vm339_vm4, %v318_v52  ;;  %v909_v18 = vmul.f32 %v877_v26, %v845_v53  ;;  %v911_v62 = vmul.f32 %v879_v45, %v847_v44  ;;  %v920_v26 = vmul.f32 %v888_v39, %v856_v38  ;;  %v922_v53 = vmul.f32 %v890_v50, %v858_v7  ;;  %v1485_v44 = vld [vmem:[%s2591_s3] sm:$0xff]  }
 0x1f4   :  { %1428 = vmatprep.subr.bf16.mxu0 %v1485_v44 }
 0x1f5   :  { %v511_v19 = vpop.permute.xlu0 %510  ;;  %v639_v22 = vpop.permute.xlu1 %638  ;;  %v931_v21 = vpack.c.bf16 %v909_v18, %v907_v16  ;;  %v938_v18 = vpack.c.bf16 %v922_v53, %v920_v26 }
 0x1f6   :  { %547 = vst.msk [vmem:[#allocation2 + $0xc0] sm:$0xff] %vm534_vm6, %v511_v19  ;;  %v887_v19 = vld [vmem:[%s2589_s4 + $0xe0] sm:$0xff] }
 0x1f7   :  { %676 = vst.msk [vmem:[#allocation2 + $0xb0] sm:$0xff] %vm664_vm8, %v639_v22  ;;  %1104 = vmatmul.mubr.bf16.gmra.mxu1 %v931_v21  ;;  %v889_v22 = vld [vmem:[%s2589_s4 + $0xf0] sm:$0xff] }
 0x1f8   :  { %612 = vst.msk [vmem:[#allocation2 + $0xc0] sm:$0xff] %vm599_vm7, %v576_v6  ;;  %1371 = vmatprep.mubr.msk.bf16.mxu1 %vm258_vm1, %v934_v23 }
 0x1f9   :  { %v771_v25 = vpop.permute.xlu0 %770  ;;  %v704_v33 = vpop.permute.xlu1 %703 }
 0x1fa   :  { %741 = vst.msk [vmem:[#allocation2 + $0xb0] sm:$0xff] %vm729_vm9, %v704_v33 }
 0x1fb   :  { %806 = vst.msk [vmem:[#allocation2 + $0xb0] sm:$0xff] %vm794_vm10, %v769_v49 }
 0x1fd   :  { %v320_v35 = vpop.permute.xlu0 %319  ;;  %v578_v36 = vpop.permute.xlu1 %577 }
 0x1fe   :  { %354 = vst.msk [vmem:[#allocation2 + $0xe0] sm:$0xff] %vm339_vm4, %v320_v35 }
 0x201   :  { %v406_v48 = vpop.permute.xlu0 %405  ;;  %v582_v32 = vpop.permute.xlu1 %581 }
 0x202   :  { %454 = vst.msk [vmem:[#allocation2] sm:$0xff] %vm453_vm5, %v406_v48  ;;  %v849_v54 = vld [vmem:[#allocation2 + $0xb0] sm:$0xff] }
 0x203   :  { %v913_v1 = vmul.f32 %v881_v47, %v849_v54 }
 0x205   :  { %v487_v8 = vpop.permute.xlu0 %486  ;;  %v436_v56 = vpop.permute.xlu1 %435  ;;  %v933_v9 = vpack.c.bf16 %v913_v1, %v911_v62 }
 0x206   :  { %535 = vst.msk [vmem:[#allocation2] sm:$0xff] %vm534_vm6, %v487_v8 }
 0x207   :  { %469 = vst.msk [vmem:[#allocation2 + $0xf0] sm:$0xff] %vm453_vm5, %v436_v56  ;;  %1112 = vmatmul.mubr.bf16.gmra.mxu1 %v933_v9 }
 0x208   :  { %600 = vst.msk [vmem:[#allocation2] sm:$0xff] %vm599_vm7, %v2084_v24  ;;  %1372 = vmatprep.mubr.msk.bf16.mxu1 %vm258_vm1, %v936_v63 }
 0x209   :  { %665 = vst.msk [vmem:[#allocation2] sm:$0xff] %vm664_vm8, %v2142_v20  ;;  %v580_v0 = vpop.permute.xlu0 %579  ;;  %v517_v2 = vpop.permute.xlu1 %516  ;;  %v859_v20 = vld [vmem:[%s2589_s4] sm:$0xff] }
 0x20a   :  { %730 = vst.msk [vmem:[#allocation2] sm:$0xff] %vm729_vm9, %v2150_v46  ;;  %v861_v46 = vld [vmem:[%s2589_s4 + $0x10] sm:$0xff] }
 0x20b   :  { %795 = vst.msk [vmem:[#allocation2] sm:$0xff] %vm794_vm10, %v2107_v40  ;;  %v893_v14 = vmul.f32 %v861_v46, %v829_v3 }
 0x20c   :  { %550 = vst.msk [vmem:[#allocation2 + $0xf0] sm:$0xff] %vm534_vm6, %v517_v2 }
 0x20d   :  { %615 = vst.msk [vmem:[#allocation2 + $0xf0] sm:$0xff] %vm599_vm7, %v582_v32  ;;  %v645_v61 = vpop.permute.xlu0 %644  ;;  %v432_v24 = vpop.permute.xlu1 %431 }
 0x20e   :  { %467 = vst.msk [vmem:[#allocation2 + $0xd0] sm:$0xff] %vm453_vm5, %v432_v24 }
 0x211   :  { %v641_v5 = vpop.permute.xlu0 %640  ;;  %v513_v11 = vpop.permute.xlu1 %512 }
 0x212   :  { %v827_v40 = vld [vmem:[#allocation2] sm:$0xff]  ;;  %677 = vst.msk [vmem:[#allocation2 + $0xc0] sm:$0xff] %vm664_vm8, %v641_v5 }
 0x213   :  { %548 = vst.msk [vmem:[#allocation2 + $0xd0] sm:$0xff] %vm534_vm6, %v513_v11  ;;  %v891_v10 = vmul.f32 %v859_v20, %v827_v40 }
 0x214   :  { %613 = vst.msk [vmem:[#allocation2 + $0xd0] sm:$0xff] %vm599_vm7, %v578_v36  ;;  %v959_v36 = vsub.s32 1, %v1614_v29 }
 0x215   :  { %v923_v28 = vpack.c.bf16 %v893_v14, %v891_v10  ;;  %v706_v57 = vpop.permute.xlu0 %705  ;;  %v643_v30 = vpop.permute.xlu1 %642 }
 0x216   :  { %742 = vst.msk [vmem:[#allocation2 + $0xc0] sm:$0xff] %vm729_vm9, %v706_v57  ;;  %v2425_v42 = vrot.slane %v2422_v37, %v959_v36 }
 0x217   :  { %678 = vst.msk [vmem:[#allocation2 + $0xd0] sm:$0xff] %vm664_vm8, %v643_v30  ;;  %1072 = vmatmul.mubr.bf16.vlgmr.msra.gmra.mxu0 %v923_v28 }
 0x218   :  { %807 = vst.msk [vmem:[#allocation2 + $0xc0] sm:$0xff] %vm794_vm10, %v771_v25  ;;  %1429 = vmatpush3.bf16.msra.mxu0 %v1485_v44 }
 0x219   :  { %v710_v4 = vpop.permute.xlu0 %709  ;;  %v708_v34 = vpop.permute.xlu1 %707 }
 0x21a   :  { %743 = vst.msk [vmem:[#allocation2 + $0xd0] sm:$0xff] %vm729_vm9, %v708_v34 }
 0x21b   :  { %808 = vst.msk [vmem:[#allocation2 + $0xd0] sm:$0xff] %vm794_vm10, %v2305_v13  ;;  %v885_v13 = vld [vmem:[%s2589_s4 + $0xd0] sm:$0xff] }
 0x21d   :  { %v434_v60 = vpop.permute.xlu0 %433  ;;  %v647_v6 = vpop.permute.xlu1 %646 }
 0x21e   :  { %468 = vst.msk [vmem:[#allocation2 + $0xe0] sm:$0xff] %vm453_vm5, %v434_v60 }
 0x21f   :  { %680 = vst.msk [vmem:[#allocation2 + $0xf0] sm:$0xff] %vm664_vm8, %v647_v6  ;;  %v851_v49 = vld [vmem:[#allocation2 + $0xc0] sm:$0xff] }
 0x220   :  { %v915_v41 = vmul.f32 %v883_v27, %v851_v49 }
 0x221   :  { %v515_v51 = vpop.permute.xlu0 %514  ;;  %v712_v58 = vpop.permute.xlu1 %711 }
 0x222   :  { %549 = vst.msk [vmem:[#allocation2 + $0xe0] sm:$0xff] %vm534_vm6, %v515_v51  ;;  %v853_v31 = vld [vmem:[#allocation2 + $0xd0] sm:$0xff] }
 0x223   :  { %745 = vst.msk [vmem:[#allocation2 + $0xf0] sm:$0xff] %vm729_vm9, %v712_v58  ;;  %v917_v52 = vmul.f32 %v885_v13, %v853_v31 }
 0x224   :  { %614 = vst.msk [vmem:[#allocation2 + $0xe0] sm:$0xff] %vm599_vm7, %v580_v0 }
 0x225   :  { %679 = vst.msk [vmem:[#allocation2 + $0xe0] sm:$0xff] %vm664_vm8, %v645_v61  ;;  %v775_v12 = vpop.permute.xlu0 %774  ;;  %v777_v15 = vpop.permute.xlu1 %776  ;;  %v935_v16 = vpack.c.bf16 %v917_v52, %v915_v41 }
 0x226   :  { %744 = vst.msk [vmem:[#allocation2 + $0xe0] sm:$0xff] %vm729_vm9, %v710_v4 }
 0x227   :  { %809 = vst.msk [vmem:[#allocation2 + $0xe0] sm:$0xff] %vm794_vm10, %v775_v12  ;;  %810 = vst.msk [vmem:[#allocation2 + $0xf0] sm:$0xff] %vm794_vm10, %v777_v15  ;;  %1120 = vmatmul.mubr.bf16.gmra.mxu1 %v935_v16 }
 0x228   :  { %1373 = vmatprep.mubr.msk.bf16.mxu1 %vm258_vm1, %v938_v18 }
 0x22e   :  { %v855_v21 = vld [vmem:[#allocation2 + $0xe0] sm:$0xff]  ;;  %v857_v23 = vld [vmem:[#allocation2 + $0xf0] sm:$0xff] }
 0x22f   :  { %v919_v25 = vmul.f32 %v887_v19, %v855_v21  ;;  %v921_v33 = vmul.f32 %v889_v22, %v857_v23 }
 0x231   :  { %v937_v35 = vpack.c.bf16 %v921_v33, %v919_v25 }
 0x233   :  { %1128 = vmatmul.mubr.bf16.gmra.mxu1 %v937_v35 }
 0x25d   :  { %v1081_v17 = vpop.f32.mrf.mxu1 }
 0x25e   :  { %v1082_v45 = vadd.f32 %v1081_v17, %v2425_v42 }
 0x25f   :  { %v1083_v43 = vpop.f32.mrf.mxu1 }
 0x260   :  { %v1138_v54 = vmax.f32 %v1082_v45, 0.0 }
 0x261   :  { %v1084_v47 = vpop.f32.mrf.mxu1 }
 0x262   :  { %v1085_v48 = vadd.f32 %v1084_v47, %v2425_v42 }
 0x263   :  { %v1086_v32 = vpop.f32.mrf.mxu1 }
 0x264   :  { %v1139_v55 = vmax.f32 %v1085_v48, 0.0 }
 0x266   :  { %v1153_v59 = vpack.c.bf16 %v1139_v55, %v1138_v54 }
 0x281   :  { %v1089_v62 = vpop.f32.mrf.mxu1 }
 0x282   :  { %v1090_v8 = vadd.f32 %v1089_v62, %v2425_v42 }
 0x283   :  { %v1091_v1 = vpop.f32.mrf.mxu1 }
 0x284   :  { %v1140_v0 = vmax.f32 %v1090_v8, 0.0  ;;  %v1164_v8 = vsub.s32 2, %v1614_v29  ;;  %v1488_v29 = vld [vmem:[%s2587_s0] sm:$0xff] }
 0x285   :  { %v1092_v56 = vpop.f32.mrf.mxu1 }
 0x286   :  { %v1093_v9 = vadd.f32 %v1092_v56, %v2425_v42  ;;  %v2456_v56 = vrot.slane %v2422_v37, %v1164_v8 }
 0x287   :  { %v1094_v63 = vpop.f32.mrf.mxu1 }
 0x288   :  { %v1141_v2 = vmax.f32 %v1093_v9, 0.0 }
 0x28a   :  { %v1154_v61 = vpack.c.bf16 %v1141_v2, %v1140_v0  ;;  %v1487_v2 = vld [vmem:[%s2587_s0 + $0x10] sm:$0xff] }
 0x295   :  { %v1097_v24 = vpop.f32.mrf.mxu1 }
 0x296   :  { %v1098_v20 = vadd.f32 %v1097_v24, %v2425_v42 }
 0x297   :  { %v1099_v3 = vpop.f32.mrf.mxu1 }
 0x298   :  { %v1142_v40 = vmax.f32 %v1098_v20, 0.0 }
 0x299   :  { %v1100_v46 = vpop.f32.mrf.mxu1 }
 0x29a   :  { %v1101_v5 = vadd.f32 %v1100_v46, %v2425_v42 }
 0x29b   :  { %v1102_v11 = vpop.f32.mrf.mxu1 }
 0x29c   :  { %v1143_v10 = vmax.f32 %v1101_v5, 0.0  ;;  %v1489_v11 = vld [vmem:[%s2587_s0 + $0x18] sm:$0xff] }
 0x29e   :  { %v1155_v14 = vpack.c.bf16 %v1143_v10, %v1142_v40 }
 0x2b7   :  { %v1105_v28 = vpop.f32.mrf.mxu1 }
 0x2b8   :  { %v1106_v41 = vadd.f32 %v1105_v28, %v2425_v42 }
 0x2b9   :  { %v1107_v57 = vpop.f32.mrf.mxu1 }
 0x2ba   :  { %v1144_v53 = vmax.f32 %v1106_v41, 0.0  ;;  %v1490_v57 = vld [vmem:[%s2587_s0 + $0x8] sm:$0xff] }
 0x2bb   :  { %v1108_v30 = vpop.f32.mrf.mxu1 }
 0x2bc   :  { %v1109_v26 = vadd.f32 %v1108_v30, %v2425_v42 }
 0x2bd   :  { %v1110_v4 = vpop.f32.mrf.mxu1 }
 0x2be   :  { %v1145_v52 = vmax.f32 %v1109_v26, 0.0 }
 0x2c0   :  { %v1156_v16 = vpack.c.bf16 %v1145_v52, %v1144_v53 }
 0x2c7   :  { %v1113_v34 = vpop.f32.mrf.mxu1 }
 0x2c8   :  { %v1114_v19 = vadd.f32 %v1113_v34, %v2425_v42 }
 0x2c9   :  { %v1115_v60 = vpop.f32.mrf.mxu1 }
 0x2ca   :  { %v1146_v35 = vmax.f32 %v1114_v19, 0.0 }
 0x2cb   :  { %v1116_v6 = vpop.f32.mrf.mxu1 }
 0x2cc   :  { %v1117_v15 = vadd.f32 %v1116_v6, %v2425_v42  ;;  %v1491_v6 = vld [vmem:[%s2587_s0 + $0x30] sm:$0xff] }
 0x2cd   :  { %v1118_v38 = vpop.f32.mrf.mxu1 }
 0x2ce   :  { %v1147_v23 = vmax.f32 %v1117_v15, 0.0 }
 0x2d0   :  { %v1157_v43 = vpack.c.bf16 %v1147_v23, %v1146_v35  ;;  %v1496_v35 = vld [vmem:[%s2587_s0 + $0x40] sm:$0xff] }
 0x2d7   :  { %v1073_v39 = vpop.f32.mrf.mxu0 }
 0x2d8   :  { %v1074_v27 = vadd.f32 %v1073_v39, %v2425_v42 }
 0x2d9   :  { %v1075_v49 = vpop.f32.mrf.mxu0 }
 0x2da   :  { %v1136_v7 = vmax.f32 %v1074_v27, 0.0 }
 0x2db   :  { %v1076_v13 = vpop.f32.mrf.mxu0 }
 0x2dc   :  { %v1077_v51 = vadd.f32 %v1076_v13, %v2425_v42  ;;  %v1492_v13 = vld [vmem:[%s2587_s0 + $0x20] sm:$0xff] }
 0x2dd   :  { %v1078_v58 = vpop.f32.mrf.mxu0 }
 0x2de   :  { %v1137_v50 = vmax.f32 %v1077_v51, 0.0 }
 0x2e0   :  { %v1152_v31 = vpack.c.bf16 %v1137_v50, %v1136_v7 }
 0x2e2   :  { %1430 = vmatprep.mubr.msk.bf16.mxu0 %vm258_vm1, %v1152_v31  ;;  %v1493_v31 = vld [vmem:[%s2587_s0 + $0x38] sm:$0xff] }
 0x2e3   :  { %1431 = vmatmul.mubr.msk.bf16.vlgmr.msra.gmra.mxu0 %vm258_vm1, %v1153_v59 }
 0x2e4   :  { %1434 = vmatprep.mubr.msk.bf16.mxu0 %vm258_vm1, %v1154_v61 }
 0x2e7   :  { %v1121_v12 = vpop.f32.mrf.mxu1 }
 0x2e8   :  { %v1122_v22 = vadd.f32 %v1121_v12, %v2425_v42  ;;  %v1494_v12 = vld [vmem:[%s2587_s0 + $0x28] sm:$0xff] }
 0x2e9   :  { %v1123_v18 = vpop.f32.mrf.mxu1 }
 0x2ea   :  { %v1148_v36 = vmax.f32 %v1122_v22, 0.0  ;;  %v1495_v22 = vld [vmem:[%s2587_s0 + $0x50] sm:$0xff] }
 0x2eb   :  { %1435 = vmatmul.mubr.msk.bf16.gmra.mxu0 %vm258_vm1, %v1155_v14  ;;  %v1124_v21 = vpop.f32.mrf.mxu1 }
 0x2ec   :  { %1438 = vmatprep.mubr.msk.bf16.mxu0 %vm258_vm1, %v1156_v16  ;;  %v1125_v25 = vadd.f32 %v1124_v21, %v2425_v42 }
 0x2ed   :  { %v1126_v33 = vpop.f32.mrf.mxu1 }
 0x2ee   :  { %v1149_v17 = vmax.f32 %v1125_v25, 0.0 }
 0x2f0   :  { %v1158_v44 = vpack.c.bf16 %v1149_v17, %v1148_v36 }
 0x2f3   :  { %v1129_v45 = vpop.f32.mrf.mxu1  ;;  %1439 = vmatmul.mubr.msk.bf16.gmra.mxu0 %vm258_vm1, %v1157_v43 }
 0x2f4   :  { %1442 = vmatprep.mubr.msk.bf16.mxu0 %vm258_vm1, %v1158_v44  ;;  %v1130_v48 = vadd.f32 %v1129_v45, %v2425_v42  ;;  %v1497_v45 = vld [vmem:[%s2587_s0 + $0x58] sm:$0xff] }
 0x2f5   :  { %v1131_v47 = vpop.f32.mrf.mxu1 }
 0x2f6   :  { %v1150_v59 = vmax.f32 %v1130_v48, 0.0 }
 0x2f7   :  { %v1132_v32 = vpop.f32.mrf.mxu1 }
 0x2f8   :  { %v1133_v54 = vadd.f32 %v1132_v32, %v2425_v42 }
 0x2f9   :  { %v1134_v55 = vpop.f32.mrf.mxu1 }
 0x2fa   :  { %v1151_v62 = vmax.f32 %v1133_v54, 0.0  ;;  %v1498_v54 = vld [vmem:[%s2587_s0 + $0x48] sm:$0xff] }
 0x2fc   :  { %v1159_v1 = vpack.c.bf16 %v1151_v62, %v1150_v59 }
 0x2fe   :  { %1443 = vmatmul.mubr.msk.bf16.gmra.mxu0 %vm258_vm1, %v1159_v1 }
 0x3a3   :  { %v1432_v9 = vpop.f32.mrf.mxu0 }
 0x3a4   :  { %v1239_v63 = vadd.f32 %v1432_v9, %v2456_v56  ;;  %v1499_v9 = vld [vmem:[%s2587_s0 + $0x70] sm:$0xff] }
 0x3a5   :  { %v1230_v0 = vpop.f32.mrf.mxu0 }
 0x3a6   :  { %v1295_v42 = vadd.f32 %v1487_v2, %v1239_v63  ;;  %v1231_v61 = vadd.f32 %v1230_v0, %v2456_v56 }
 0x3a7   :  { %v1433_v24 = vpop.f32.mrf.mxu0 }
 0x3a8   :  { %v1311_v3 = vmax.f32 %v1295_v42, 0.0  ;;  %v1293_v20 = vadd.f32 %v1488_v29, %v1231_v61  ;;  %v1242_v37 = vadd.f32 %v1433_v24, %v2456_v56  ;;  %v1500_v61 = vld [vmem:[%s2587_s0 + $0x60] sm:$0xff] }
 0x3a9   :  { %v1233_v46 = vpop.f32.mrf.mxu0 }
 0x3aa   :  { %1327 = vst.msk [vmem:[%s2592_s6 + $0x10] sm:$0xff] %vm85_vm0, %v1311_v3  ;;  %v1309_v5 = vmax.f32 %v1293_v20, 0.0  ;;  %v1296_v40 = vadd.f32 %v1489_v11, %v1242_v37  ;;  %v1234_v10 = vadd.f32 %v1233_v46, %v2456_v56  ;;  %v1501_v37 = vld [vmem:[%s2587_s0 + $0x78] sm:$0xff] }
 0x3ab   :  { %v1436_v14 = vpop.f32.mrf.mxu0 }
 0x3ac   :  { %1325 = vst.msk [vmem:[%s2592_s6] sm:$0xff] %vm85_vm0, %v1309_v5  ;;  %v1312_v28 = vmax.f32 %v1296_v40, 0.0  ;;  %v1294_v30 = vadd.f32 %v1490_v57, %v1234_v10  ;;  %v1255_v4 = vadd.f32 %v1436_v14, %v2456_v56  ;;  %v1502_v40 = vld [vmem:[%s2587_s0 + $0x68] sm:$0xff] }
 0x3ad   :  { %v1246_v34 = vpop.f32.mrf.mxu0 }
 0x3ae   :  { %1328 = vst.msk [vmem:[%s2592_s6 + $0x18] sm:$0xff] %vm85_vm0, %v1312_v28  ;;  %v1310_v60 = vmax.f32 %v1294_v30, 0.0  ;;  %v1299_v38 = vadd.f32 %v1491_v6, %v1255_v4  ;;  %v1247_v39 = vadd.f32 %v1246_v34, %v2456_v56 }
 0x3af   :  { %v1437_v49 = vpop.f32.mrf.mxu0 }
 0x3b0   :  { %1326 = vst.msk [vmem:[%s2592_s6 + $0x8] sm:$0xff] %vm85_vm0, %v1310_v60  ;;  %v1315_v27 = vmax.f32 %v1299_v38, 0.0  ;;  %v1297_v51 = vadd.f32 %v1492_v13, %v1247_v39  ;;  %v1258_v58 = vadd.f32 %v1437_v49, %v2456_v56 }
 0x3b1   :  { %v1249_v7 = vpop.f32.mrf.mxu0 }
 0x3b2   :  { %1331 = vst.msk [vmem:[%s2592_s6 + $0x30] sm:$0xff] %vm85_vm0, %v1315_v27  ;;  %v1313_v50 = vmax.f32 %v1297_v51, 0.0  ;;  %v1300_v26 = vadd.f32 %v1493_v31, %v1258_v58  ;;  %v1250_v41 = vadd.f32 %v1249_v7, %v2456_v56 }
 0x3b3   :  { %v1440_v52 = vpop.f32.mrf.mxu0 }
 0x3b4   :  { %1329 = vst.msk [vmem:[%s2592_s6 + $0x20] sm:$0xff] %vm85_vm0, %v1313_v50  ;;  %v1316_v53 = vmax.f32 %v1300_v26, 0.0  ;;  %v1298_v15 = vadd.f32 %v1494_v12, %v1250_v41  ;;  %v1271_v16 = vadd.f32 %v1440_v52, %v2456_v56 }
 0x3b5   :  { %v1262_v18 = vpop.f32.mrf.mxu0 }
 0x3b6   :  { %1332 = vst.msk [vmem:[%s2592_s6 + $0x38] sm:$0xff] %vm85_vm0, %v1316_v53  ;;  %v1314_v19 = vmax.f32 %v1298_v15, 0.0  ;;  %v1303_v21 = vadd.f32 %v1495_v22, %v1271_v16  ;;  %v1263_v23 = vadd.f32 %v1262_v18, %v2456_v56 }
 0x3b7   :  { %v1441_v25 = vpop.f32.mrf.mxu0 }
 0x3b8   :  { %1330 = vst.msk [vmem:[%s2592_s6 + $0x28] sm:$0xff] %vm85_vm0, %v1314_v19  ;;  %v1319_v33 = vmax.f32 %v1303_v21, 0.0  ;;  %v1301_v36 = vadd.f32 %v1496_v35, %v1263_v23  ;;  %v1274_v17 = vadd.f32 %v1441_v25, %v2456_v56 }
 0x3b9   :  { %v1265_v43 = vpop.f32.mrf.mxu0 }
 0x3ba   :  { %1335 = vst.msk [vmem:[%s2592_s6 + $0x50] sm:$0xff] %vm85_vm0, %v1319_v33  ;;  %v1317_v44 = vmax.f32 %v1301_v36, 0.0  ;;  %v1304_v47 = vadd.f32 %v1497_v45, %v1274_v17  ;;  %v1266_v48 = vadd.f32 %v1265_v43, %v2456_v56 }
 0x3bc   :  { %1333 = vst.msk [vmem:[%s2592_s6 + $0x40] sm:$0xff] %vm85_vm0, %v1317_v44  ;;  %v1320_v32 = vmax.f32 %v1304_v47, 0.0  ;;  %v1302_v55 = vadd.f32 %v1498_v54, %v1266_v48 }
 0x3be   :  { %1336 = vst.msk [vmem:[%s2592_s6 + $0x58] sm:$0xff] %vm85_vm0, %v1320_v32  ;;  %v1318_v59 = vmax.f32 %v1302_v55, 0.0  ;;  %v1444_v62 = vpop.f32.mrf.mxu0 }
 0x3bf   :  { %v1287_v1 = vadd.f32 %v1444_v62, %v2456_v56 }
 0x3c0   :  { %1334 = vst.msk [vmem:[%s2592_s6 + $0x48] sm:$0xff] %vm85_vm0, %v1318_v59  ;;  %v1278_v8 = vpop.f32.mrf.mxu0 }
 0x3c1   :  { %v1307_v63 = vadd.f32 %v1499_v9, %v1287_v1  ;;  %v1279_v0 = vadd.f32 %v1278_v8, %v2456_v56 }
 0x3c2   :  { %v1445_v2 = vpop.f32.mrf.mxu0 }
 0x3c3   :  { %v1323_v42 = vmax.f32 %v1307_v63, 0.0  ;;  %v1305_v24 = vadd.f32 %v1500_v61, %v1279_v0  ;;  %v1290_v3 = vadd.f32 %v1445_v2, %v2456_v56 }
 0x3c4   :  { %v1281_v29 = vpop.f32.mrf.mxu0 }
 0x3c5   :  { %1339 = vst.msk [vmem:[%s2592_s6 + $0x70] sm:$0xff] %vm85_vm0, %v1323_v42  ;;  %v1321_v20 = vmax.f32 %v1305_v24, 0.0  ;;  %v1308_v46 = vadd.f32 %v1501_v37, %v1290_v3  ;;  %v1282_v5 = vadd.f32 %v1281_v29, %v2456_v56 }
 0x3c7   :  { %1337 = vst.msk [vmem:[%s2592_s6 + $0x60] sm:$0xff] %vm85_vm0, %v1321_v20  ;;  %v1324_v11 = vmax.f32 %v1308_v46, 0.0  ;;  %v1306_v10 = vadd.f32 %v1502_v40, %v1282_v5 }
 0x3c9   :  { %1340 = vst.msk [vmem:[%s2592_s6 + $0x78] sm:$0xff] %vm85_vm0, %v1324_v11  ;;  %v1322_v14 = vmax.f32 %v1306_v10, 0.0 }
 0x3cb   :  { %1338 = vst.msk [vmem:[%s2592_s6 + $0x68] sm:$0xff] %vm85_vm0, %v1322_v14 }

</bundles_post_ra>
